<compile_context>
chip_gen: v6e
topology: v6e:2x2x1
jax: 0.10.0
libtpu: 0.0.40
codegen_flags: <defaults>
</compile_context>

<pallas_src>
import jax
import jax.numpy as jnp
from jax.experimental import pallas as pl
from jax.experimental.pallas import tpu as pltpu

BN_EPS = 1e-5


def _vmem_limit_bytes():
    # Generation-aware VMEM budget: ~3/4 of physical (128 MiB v5e/v6e, 64 MiB v7x),
    # conservative 48 MiB fallback if the query is unavailable.
    try:
        cap = int(pltpu.get_tpu_info().vmem_capacity_bytes)
        return int(min(cap * 3 // 4, 96 * 1024 * 1024))
    except Exception:
        return 48 * 1024 * 1024


# --------------------------------------------------------------------------------------
# Pass 1 kernels: conv (shifted matmuls / VPU MACs) + per-channel moment partials
# --------------------------------------------------------------------------------------
def _make_conv_moments_kernel(kh, kw, stride, cin_g, cout_g, hout, wout):
    """Standard / grouped conv for one (group, image) block.

    x_ref:   (Hin, Win, S2*cin_g)   compute dtype (S2 = stride*stride polyphase blocks)
    w_ref:   (kh*kw, cin_g, cout_g) compute dtype
    z_ref:   (hout*wout, cout_g)    z dtype (bf16 on the fast path)
    mom_ref: (2, cout_g)            f32 partials: rows = [sum(z), sum(z*z)]
    """
    s = stride

    def kernel(x_ref, w_ref, z_ref, mom_ref):
        acc = jnp.zeros((hout * wout, cout_g), jnp.float32)
        for i in range(kh):                      # static unroll over the kh*kw taps
            for j in range(kw):
                ph = (i % s) * s + (j % s)       # polyphase channel block (stride handling)
                di, dj = i // s, j // s          # unit-stride spatial offset in the tile
                xt = x_ref[di:di + hout, dj:dj + wout,
                           ph * cin_g:(ph + 1) * cin_g]
                xt = xt.reshape(hout * wout, cin_g)
                acc = acc + jnp.dot(xt, w_ref[i * kw + j],
                                    preferred_element_type=jnp.float32)
        z_ref[...] = acc.astype(z_ref.dtype)
        ssum = jnp.sum(acc, axis=0, keepdims=True)
        ssq = jnp.sum(acc * acc, axis=0, keepdims=True)
        mom_ref[...] = jnp.concatenate([ssum, ssq], axis=0)

    return kernel


def _make_dw_conv_moments_kernel(kh, kw, stride, C, hout, wout):
    """Depthwise conv for one image block: channels on lanes, VPU multiply-adds.

    x_ref:   (Hin, Win, S2*C) compute dtype (phase-major polyphase channel blocks)
    w_ref:   (kh*kw, 1, C)    f32 per-channel taps
    z_ref:   (hout*wout, C)   z dtype
    mom_ref: (2, C)           f32 partials
    """
    s = stride

    def kernel(x_ref, w_ref, z_ref, mom_ref):
        acc = jnp.zeros((hout, wout, C), jnp.float32)
        for i in range(kh):
            for j in range(kw):
                ph = (i % s) * s + (j % s)
                di, dj = i // s, j // s
                xt = x_ref[di:di + hout, dj:dj + wout,
                           ph * C:(ph + 1) * C].astype(jnp.float32)
                acc = acc + xt * w_ref[i * kw + j]
        a2 = acc.reshape(hout * wout, C)
        z_ref[...] = a2.astype(z_ref.dtype)
        ssum = jnp.sum(a2, axis=0, keepdims=True)
        ssq = jnp.sum(a2 * a2, axis=0, keepdims=True)
        mom_ref[...] = jnp.concatenate([ssum, ssq], axis=0)

    return kernel


def _conv_pass1(xr, wr, kh, kw, stride, hout, wout, z_dtype, vmem_limit):
    N, G, Hin, Win, Cg2 = xr.shape
    KK, cin_g, cout_g = wr.shape[1], wr.shape[2], wr.shape[3]
    kernel = _make_conv_moments_kernel(kh, kw, stride, cin_g, cout_g, hout, wout)
    return pl.pallas_call(
        kernel,
        out_shape=(jax.ShapeDtypeStruct((G, N, hout * wout, cout_g), z_dtype),
                   jax.ShapeDtypeStruct((G, N, 2, cout_g), jnp.float32)),
        grid_spec=pltpu.PrefetchScalarGridSpec(
            num_scalar_prefetch=0,
            grid=(G, N),
            in_specs=[
                pl.BlockSpec((None, None, Hin, Win, Cg2), lambda g, n: (n, g, 0, 0, 0)),
                pl.BlockSpec((None, KK, cin_g, cout_g), lambda g, n: (g, 0, 0, 0)),
            ],
            out_specs=[
                pl.BlockSpec((None, None, hout * wout, cout_g), lambda g, n: (g, n, 0, 0)),
                pl.BlockSpec((None, None, 2, cout_g), lambda g, n: (g, n, 0, 0)),
            ],
        ),
        compiler_params=pltpu.CompilerParams(
            dimension_semantics=("parallel", "parallel"),
            vmem_limit_bytes=vmem_limit,
        ),
    )(xr, wr)


def _dw_conv_pass1(xr, wd, kh, kw, stride, C, hout, wout, z_dtype, vmem_limit):
    N, Hin, Win, Cs2 = xr.shape
    KK = kh * kw
    kernel = _make_dw_conv_moments_kernel(kh, kw, stride, C, hout, wout)
    return pl.pallas_call(
        kernel,
        out_shape=(jax.ShapeDtypeStruct((N, hout * wout, C), z_dtype),
                   jax.ShapeDtypeStruct((N, 2, C), jnp.float32)),
        grid_spec=pltpu.PrefetchScalarGridSpec(
            num_scalar_prefetch=0,
            grid=(N,),
            in_specs=[
                pl.BlockSpec((None, Hin, Win, Cs2), lambda n: (n, 0, 0, 0)),
                pl.BlockSpec((KK, 1, C), lambda n: (0, 0, 0)),
            ],
            out_specs=[
                pl.BlockSpec((None, hout * wout, C), lambda n: (n, 0, 0)),
                pl.BlockSpec((None, 2, C), lambda n: (n, 0, 0)),
            ],
        ),
        compiler_params=pltpu.CompilerParams(
            dimension_semantics=("parallel",),
            vmem_limit_bytes=vmem_limit,
        ),
    )(xr, wd)


# --------------------------------------------------------------------------------------
# Pass 2: folded-BN affine + SiLU (elementwise, fully parallel grid)
# --------------------------------------------------------------------------------------
def _bn_silu_kernel(z_ref, scale_ref, shift_ref, o_ref):
    zn = z_ref[...].astype(jnp.float32) * scale_ref[...] + shift_ref[...]
    o_ref[...] = (zn * jax.nn.sigmoid(zn)).astype(o_ref.dtype)


def _bn_silu(z4, scale, shift, out_dtype, vmem_limit):
    # z4: (B, N, M, C); scale/shift: (B, 1, C) f32 -> (B, N, M, C) out_dtype
    B, N, M, C = z4.shape
    return pl.pallas_call(
        _bn_silu_kernel,
        out_shape=jax.ShapeDtypeStruct((B, N, M, C), out_dtype),
        grid_spec=pltpu.PrefetchScalarGridSpec(
            num_scalar_prefetch=0,
            grid=(B, N),
            in_specs=[
                pl.BlockSpec((None, None, M, C), lambda b, n: (b, n, 0, 0)),
                pl.BlockSpec((None, 1, C), lambda b, n: (b, 0, 0)),
                pl.BlockSpec((None, 1, C), lambda b, n: (b, 0, 0)),
            ],
            out_specs=pl.BlockSpec((None, None, M, C), lambda b, n: (b, n, 0, 0)),
        ),
        compiler_params=pltpu.CompilerParams(
            dimension_semantics=("parallel", "parallel"),
            vmem_limit_bytes=vmem_limit,
        ),
    )(z4, scale, shift)


# --------------------------------------------------------------------------------------
# Wrapper-side layout helpers (pure XLA, single pass over the activation)
# --------------------------------------------------------------------------------------
def _space_to_depth_phase_major(xp, s):
    """(N, Hp, Wp, C) -> (N, ceil(Hp/s), ceil(Wp/s), s*s*C), channel = phase*C + c."""
    if s == 1:
        return xp
    N, Hp, Wp, C = xp.shape
    H2, W2 = -(-Hp // s), -(-Wp // s)
    xp = jnp.pad(xp, ((0, 0), (0, H2 * s - Hp), (0, W2 * s - Wp), (0, 0)))
    xp = xp.reshape(N, H2, s, W2, s, C)
    xp = jnp.transpose(xp, (0, 1, 3, 2, 4, 5))
    return xp.reshape(N, H2, W2, s * s * C)


def _prep_input_grouped(xp, s, G):
    """(N, Hp, Wp, G*cg) -> (N, G, Hin, Win, s*s*cg), per-group channel = phase*cg + c."""
    N, Hp, Wp, Cin = xp.shape
    cg = Cin // G
    if s == 1:
        x = xp.reshape(N, Hp, Wp, G, cg)
        return jnp.transpose(x, (0, 3, 1, 2, 4))
    H2, W2 = -(-Hp // s), -(-Wp // s)
    x = jnp.pad(xp, ((0, 0), (0, H2 * s - Hp), (0, W2 * s - Wp), (0, 0)))
    x = x.reshape(N, H2, s, W2, s, G, cg)
    x = jnp.transpose(x, (0, 5, 1, 3, 2, 4, 6))      # (N, G, H2, W2, pi, pj, cg)
    return x.reshape(N, G, H2, W2, s * s * cg)


def _moments_to_affine(mom, gamma, beta, m_true):
    """mom: (..., 2, C) stacked [sum, sumsq] -> per-channel (scale, shift) in f32."""
    ssum = mom[..., 0, :]
    ssq = mom[..., 1, :]
    mean = ssum / m_true
    var = jnp.maximum(ssq / m_true - mean * mean, 0.0)
    scale = gamma * jax.lax.rsqrt(var + BN_EPS)
    shift = beta - mean * scale
    return scale, shift


# --------------------------------------------------------------------------------------
# Forward wrappers
# --------------------------------------------------------------------------------------
def conv_block_forward_nhwc(x, weight, gamma, beta, *, stride, padding, groups,
                            compute_dtype=jnp.bfloat16):
    """ConvBlock forward, NHWC in / NHWC out.  weight: (Cout, Cin/groups, kh, kw)."""
    N, H, W, Cin = x.shape
    Cout, cin_g, kh, kw = weight.shape
    G = groups
    cout_g = Cout // G
    s = stride
    Hout = (H + 2 * padding - kh) // s + 1
    Wout = (W + 2 * padding - kw) // s + 1
    out_dtype = x.dtype
    z_dtype = jnp.bfloat16 if compute_dtype == jnp.bfloat16 else jnp.float32
    vmem_limit = _vmem_limit_bytes()
    m_true = jnp.float32(N * Hout * Wout)

    gamma = gamma.astype(jnp.float32)
    beta = beta.astype(jnp.float32)

    xp = jnp.pad(x, ((0, 0), (padding, padding), (padding, padding), (0, 0)))
    xp = xp.astype(compute_dtype)

    depthwise = (G == Cin) and (Cout == Cin) and (cin_g == 1)

    if depthwise:
        C = Cin
        xr = _space_to_depth_phase_major(xp, s)                      # (N, Hin, Win, s2*C)
        assert (kh - 1) // s + Hout <= xr.shape[1]
        assert (kw - 1) // s + Wout <= xr.shape[2]
        wd = jnp.transpose(weight.reshape(C, kh, kw), (1, 2, 0))     # (kh, kw, C)
        wd = wd.reshape(kh * kw, 1, C).astype(jnp.float32)

        z, mom = _dw_conv_pass1(xr, wd, kh, kw, s, C, Hout, Wout, z_dtype, vmem_limit)
        scale, shift = _moments_to_affine(jnp.sum(mom, axis=0, keepdims=True),
                                          gamma.reshape(1, C), beta.reshape(1, C), m_true)
        y = _bn_silu(z.reshape(1, N, Hout * Wout, C),
                     scale.reshape(1, 1, C), shift.reshape(1, 1, C),
                     out_dtype, vmem_limit)
        return y.reshape(N, Hout, Wout, C)

    # standard / grouped convolution
    xr = _prep_input_grouped(xp, s, G)                               # (N, G, Hin, Win, s2*cg)
    assert (kh - 1) // s + Hout <= xr.shape[2]
    assert (kw - 1) // s + Wout <= xr.shape[3]
    wr = weight.reshape(G, cout_g, cin_g, kh, kw)
    wr = jnp.transpose(wr, (0, 3, 4, 2, 1)).reshape(G, kh * kw, cin_g, cout_g)
    wr = wr.astype(compute_dtype)

    z, mom = _conv_pass1(xr, wr, kh, kw, s, Hout, Wout, z_dtype, vmem_limit)
    scale, shift = _moments_to_affine(jnp.sum(mom, axis=1),
                                      gamma.reshape(G, cout_g), beta.reshape(G, cout_g),
                                      m_true)                        # (G, cout_g)
    y = _bn_silu(z, scale.reshape(G, 1, cout_g), shift.reshape(G, 1, cout_g),
                 out_dtype, vmem_limit)                              # (G, N, HW, cout_g)
    y = y.reshape(G, N, Hout, Wout, cout_g)
    y = jnp.transpose(y, (1, 2, 3, 0, 4)).reshape(N, Hout, Wout, Cout)
    return y


def conv_block_forward(x_nchw, weight, bias=None, gamma=None, beta=None, *,
                       stride, padding, groups, compute_dtype=jnp.bfloat16):
    """NCHW boundary adapter matching the PyTorch module interface.

    `bias` is accepted for parity with nn.Conv2d but intentionally ignored: training-mode
    BatchNorm subtracts the batch mean, which cancels it exactly.
    In a full network, prefer conv_block_forward_nhwc and stay NHWC end-to-end so the two
    boundary transposes below disappear.
    """
    del bias
    x_nhwc = jnp.transpose(x_nchw, (0, 2, 3, 1))
    y = conv_block_forward_nhwc(x_nhwc, weight, gamma, beta,
                                stride=stride, padding=padding, groups=groups,
                                compute_dtype=compute_dtype)
    return jnp.transpose(y, (0, 3, 1, 2))


# --------------------------------------------------------------------------------------
# Pure-JAX reference mirroring the PyTorch forward (BN in training mode)
# --------------------------------------------------------------------------------------
def _reference(x, weight, bias, gamma, beta, *, stride, padding, groups):
    z = jax.lax.conv_general_dilated(
        x, weight, window_strides=(stride, stride),
        padding=((padding, padding), (padding, padding)),
        dimension_numbers=("NCHW", "OIHW", "NCHW"),
        feature_group_count=groups,
        precision=jax.lax.Precision.HIGHEST)
    z = z + bias[None, :, None, None]
    mean = jnp.mean(z, axis=(0, 2, 3), keepdims=True)
    var = jnp.mean((z - mean) ** 2, axis=(0, 2, 3), keepdims=True)
    zn = (z - mean) * jax.lax.rsqrt(var + BN_EPS) \
        * gamma[None, :, None, None] + beta[None, :, None, None]
    return zn * jax.nn.sigmoid(zn)


if __name__ == "__main__":
    key = jax.random.PRNGKey(0)

    # --- Case 1: ConvBlock(4, 8, kernel_size=3, stride=1, padding=1, groups=1) ----------
    N, Cin, H, W = 2, 4, 16, 16
    Cout, kh, kw = 8, 3, 3
    kx, kw_, kb = jax.random.split(key, 3)
    x = jax.random.normal(kx, (N, Cin, H, W), dtype=jnp.float32)
    weight = jax.random.normal(kw_, (Cout, Cin, kh, kw), dtype=jnp.float32) * 0.1
    bias = jax.random.normal(kb, (Cout,), dtype=jnp.float32) * 0.1   # cancelled by BN
    gamma = jnp.linspace(0.5, 1.5, Cout).astype(jnp.float32)
    beta = jnp.linspace(-0.2, 0.2, Cout).astype(jnp.float32)

    ref = _reference(x, weight, bias, gamma, beta, stride=1, padding=1, groups=1)

    out_f32 = conv_block_forward(x, weight, bias, gamma, beta,
                                 stride=1, padding=1, groups=1,
                                 compute_dtype=jnp.float32)
    out_f32 = jax.block_until_ready(out_f32)
    assert out_f32.shape == ref.shape, (out_f32.shape, ref.shape)
    assert jnp.allclose(out_f32, ref, rtol=2e-4, atol=2e-4), \
        float(jnp.max(jnp.abs(out_f32 - ref)))

    out_bf16 = conv_block_forward(x, weight, bias, gamma, beta,
                                  stride=1, padding=1, groups=1,
                                  compute_dtype=jnp.bfloat16)
    out_bf16 = jax.block_until_ready(out_bf16)
    assert jnp.allclose(out_bf16, ref, rtol=5e-2, atol=5e-2), \
        float(jnp.max(jnp.abs(out_bf16 - ref)))

    # --- Case 2: stem-like ConvBlock(4, 8, kernel_size=3, stride=2, padding=1) ----------
    ref_s2 = _reference(x, weight, bias, gamma, beta, stride=2, padding=1, groups=1)
    out_s2 = conv_block_forward(x, weight, bias, gamma, beta,
                                stride=2, padding=1, groups=1,
                                compute_dtype=jnp.float32)
    out_s2 = jax.block_until_ready(out_s2)
    assert out_s2.shape == ref_s2.shape, (out_s2.shape, ref_s2.shape)
    assert jnp.allclose(out_s2, ref_s2, rtol=2e-4, atol=2e-4), \
        float(jnp.max(jnp.abs(out_s2 - ref_s2)))

    # --- Case 3: depthwise ConvBlock(8, 8, kernel_size=3, stride=2, padding=1, groups=8) -
    C = 8
    kxd, kwd = jax.random.split(jax.random.PRNGKey(1), 2)
    xd = jax.random.normal(kxd, (2, C, 16, 16), dtype=jnp.float32)
    wd = jax.random.normal(kwd, (C, 1, 3, 3), dtype=jnp.float32) * 0.1
    bd = jnp.zeros((C,), jnp.float32)
    gd = jnp.linspace(0.8, 1.2, C).astype(jnp.float32)
    btd = jnp.linspace(-0.1, 0.1, C).astype(jnp.float32)
    refd = _reference(xd, wd, bd, gd, btd, stride=2, padding=1, groups=C)
    outd = conv_block_forward(xd, wd, bd, gd, btd, stride=2, padding=1, groups=C,
                              compute_dtype=jnp.float32)
    outd = jax.block_until_ready(outd)
    assert outd.shape == refd.shape, (outd.shape, refd.shape)
    assert jnp.allclose(outd, refd, rtol=2e-4, atol=2e-4), \
        float(jnp.max(jnp.abs(outd - refd)))

    print("KERNEL_OK")
</pallas_src>

<mosaic_0001>
module attributes {stable_mosaic.version = 11 : i64} {
  func.func @kernel(%arg0: i32, %arg1: i32, %arg2: memref<1x1x18x18x4xf32, #tpu.memory_space<vmem>>, %arg3: memref<1x9x4x8xf32, #tpu.memory_space<vmem>>, %arg4: memref<1x1x256x8xf32, #tpu.memory_space<vmem>>, %arg5: memref<1x1x2x8xf32, #tpu.memory_space<vmem>>) attributes {dimension_semantics = [#tpu.dimension_semantics<parallel>, #tpu.dimension_semantics<parallel>], iteration_bounds = array<i64: 1, 2>, scalar_prefetch = 0 : i64, scratch_operands = 0 : i64, tpu.core_type = #tpu.core_type<tc>, window_params = [{transform_indices = @transform_0, window_bounds = array<i64: 1, 1, 18, 18, 4>}, {transform_indices = @transform_1, window_bounds = array<i64: 1, 9, 4, 8>}, {transform_indices = @transform_2, window_bounds = array<i64: 1, 1, 256, 8>}, {transform_indices = @transform_3, window_bounds = array<i64: 1, 1, 2, 8>}]} {
    %cst = arith.constant 0.000000e+00 : f32
    %0 = vector.broadcast %cst : f32 to vector<256x8xf32>
    %c0 = arith.constant 0 : index
    %c0_0 = arith.constant 0 : index
    %c0_1 = arith.constant 0 : index
    %c0_2 = arith.constant 0 : index
    %c0_3 = arith.constant 0 : index
    %1 = vector.load %arg2[%c0, %c0_0, %c0_1, %c0_2, %c0_3] : memref<1x1x18x18x4xf32, #tpu.memory_space<vmem>>, vector<1x1x16x16x4xf32>
    %2 = vector.shape_cast %1 : vector<1x1x16x16x4xf32> to vector<16x16x4xf32>
    %3 = vector.shape_cast %2 : vector<16x16x4xf32> to vector<256x4xf32>
    %c0_4 = arith.constant 0 : index
    %c0_5 = arith.constant 0 : index
    %c0_6 = arith.constant 0 : index
    %c0_7 = arith.constant 0 : index
    %4 = vector.load %arg3[%c0_4, %c0_5, %c0_6, %c0_7] : memref<1x9x4x8xf32, #tpu.memory_space<vmem>>, vector<1x1x4x8xf32>
    %5 = vector.shape_cast %4 : vector<1x1x4x8xf32> to vector<4x8xf32>
    %cst_8 = arith.constant dense<0.000000e+00> : vector<256x8xf32>
    %6 = tpu.matmul %3, %5, %cst_8 {dimension_numbers = #tpu.dot_dimension_numbers<[1], [0], [0], [1], [0, 0, 1, 1], [], []>} : vector<256x4xf32>, vector<4x8xf32>, vector<256x8xf32> -> vector<256x8xf32>
    %7 = arith.addf %0, %6 : vector<256x8xf32>
    %c0_9 = arith.constant 0 : index
    %c0_10 = arith.constant 0 : index
    %c0_11 = arith.constant 0 : index
    %c1 = arith.constant 1 : index
    %c0_12 = arith.constant 0 : index
    %8 = vector.load %arg2[%c0_9, %c0_10, %c0_11, %c1, %c0_12] : memref<1x1x18x18x4xf32, #tpu.memory_space<vmem>>, vector<1x1x16x16x4xf32>
    %9 = vector.shape_cast %8 : vector<1x1x16x16x4xf32> to vector<16x16x4xf32>
    %10 = vector.shape_cast %9 : vector<16x16x4xf32> to vector<256x4xf32>
    %c0_13 = arith.constant 0 : index
    %c1_14 = arith.constant 1 : index
    %c0_15 = arith.constant 0 : index
    %c0_16 = arith.constant 0 : index
    %11 = vector.load %arg3[%c0_13, %c1_14, %c0_15, %c0_16] : memref<1x9x4x8xf32, #tpu.memory_space<vmem>>, vector<1x1x4x8xf32>
    %12 = vector.shape_cast %11 : vector<1x1x4x8xf32> to vector<4x8xf32>
    %cst_17 = arith.constant dense<0.000000e+00> : vector<256x8xf32>
    %13 = tpu.matmul %10, %12, %cst_17 {dimension_numbers = #tpu.dot_dimension_numbers<[1], [0], [0], [1], [0, 0, 1, 1], [], []>} : vector<256x4xf32>, vector<4x8xf32>, vector<256x8xf32> -> vector<256x8xf32>
    %14 = arith.addf %7, %13 : vector<256x8xf32>
    %c0_18 = arith.constant 0 : index
    %c0_19 = arith.constant 0 : index
    %c0_20 = arith.constant 0 : index
    %c2 = arith.constant 2 : index
    %c0_21 = arith.constant 0 : index
    %15 = vector.load %arg2[%c0_18, %c0_19, %c0_20, %c2, %c0_21] : memref<1x1x18x18x4xf32, #tpu.memory_space<vmem>>, vector<1x1x16x16x4xf32>
    %16 = vector.shape_cast %15 : vector<1x1x16x16x4xf32> to vector<16x16x4xf32>
    %17 = vector.shape_cast %16 : vector<16x16x4xf32> to vector<256x4xf32>
    %c0_22 = arith.constant 0 : index
    %c2_23 = arith.constant 2 : index
    %c0_24 = arith.constant 0 : index
    %c0_25 = arith.constant 0 : index
    %18 = vector.load %arg3[%c0_22, %c2_23, %c0_24, %c0_25] : memref<1x9x4x8xf32, #tpu.memory_space<vmem>>, vector<1x1x4x8xf32>
    %19 = vector.shape_cast %18 : vector<1x1x4x8xf32> to vector<4x8xf32>
    %cst_26 = arith.constant dense<0.000000e+00> : vector<256x8xf32>
    %20 = tpu.matmul %17, %19, %cst_26 {dimension_numbers = #tpu.dot_dimension_numbers<[1], [0], [0], [1], [0, 0, 1, 1], [], []>} : vector<256x4xf32>, vector<4x8xf32>, vector<256x8xf32> -> vector<256x8xf32>
    %21 = arith.addf %14, %20 : vector<256x8xf32>
    %c0_27 = arith.constant 0 : index
    %c0_28 = arith.constant 0 : index
    %c1_29 = arith.constant 1 : index
    %c0_30 = arith.constant 0 : index
    %c0_31 = arith.constant 0 : index
    %22 = vector.load %arg2[%c0_27, %c0_28, %c1_29, %c0_30, %c0_31] : memref<1x1x18x18x4xf32, #tpu.memory_space<vmem>>, vector<1x1x16x16x4xf32>
    %23 = vector.shape_cast %22 : vector<1x1x16x16x4xf32> to vector<16x16x4xf32>
    %24 = vector.shape_cast %23 : vector<16x16x4xf32> to vector<256x4xf32>
    %c0_32 = arith.constant 0 : index
    %c3 = arith.constant 3 : index
    %c0_33 = arith.constant 0 : index
    %c0_34 = arith.constant 0 : index
    %25 = vector.load %arg3[%c0_32, %c3, %c0_33, %c0_34] : memref<1x9x4x8xf32, #tpu.memory_space<vmem>>, vector<1x1x4x8xf32>
    %26 = vector.shape_cast %25 : vector<1x1x4x8xf32> to vector<4x8xf32>
    %cst_35 = arith.constant dense<0.000000e+00> : vector<256x8xf32>
    %27 = tpu.matmul %24, %26, %cst_35 {dimension_numbers = #tpu.dot_dimension_numbers<[1], [0], [0], [1], [0, 0, 1, 1], [], []>} : vector<256x4xf32>, vector<4x8xf32>, vector<256x8xf32> -> vector<256x8xf32>
    %28 = arith.addf %21, %27 : vector<256x8xf32>
    %c0_36 = arith.constant 0 : index
    %c0_37 = arith.constant 0 : index
    %c1_38 = arith.constant 1 : index
    %c1_39 = arith.constant 1 : index
    %c0_40 = arith.constant 0 : index
    %29 = vector.load %arg2[%c0_36, %c0_37, %c1_38, %c1_39, %c0_40] : memref<1x1x18x18x4xf32, #tpu.memory_space<vmem>>, vector<1x1x16x16x4xf32>
    %30 = vector.shape_cast %29 : vector<1x1x16x16x4xf32> to vector<16x16x4xf32>
    %31 = vector.shape_cast %30 : vector<16x16x4xf32> to vector<256x4xf32>
    %c0_41 = arith.constant 0 : index
    %c4 = arith.constant 4 : index
    %c0_42 = arith.constant 0 : index
    %c0_43 = arith.constant 0 : index
    %32 = vector.load %arg3[%c0_41, %c4, %c0_42, %c0_43] : memref<1x9x4x8xf32, #tpu.memory_space<vmem>>, vector<1x1x4x8xf32>
    %33 = vector.shape_cast %32 : vector<1x1x4x8xf32> to vector<4x8xf32>
    %cst_44 = arith.constant dense<0.000000e+00> : vector<256x8xf32>
    %34 = tpu.matmul %31, %33, %cst_44 {dimension_numbers = #tpu.dot_dimension_numbers<[1], [0], [0], [1], [0, 0, 1, 1], [], []>} : vector<256x4xf32>, vector<4x8xf32>, vector<256x8xf32> -> vector<256x8xf32>
    %35 = arith.addf %28, %34 : vector<256x8xf32>
    %c0_45 = arith.constant 0 : index
    %c0_46 = arith.constant 0 : index
    %c1_47 = arith.constant 1 : index
    %c2_48 = arith.constant 2 : index
    %c0_49 = arith.constant 0 : index
    %36 = vector.load %arg2[%c0_45, %c0_46, %c1_47, %c2_48, %c0_49] : memref<1x1x18x18x4xf32, #tpu.memory_space<vmem>>, vector<1x1x16x16x4xf32>
    %37 = vector.shape_cast %36 : vector<1x1x16x16x4xf32> to vector<16x16x4xf32>
    %38 = vector.shape_cast %37 : vector<16x16x4xf32> to vector<256x4xf32>
    %c0_50 = arith.constant 0 : index
    %c5 = arith.constant 5 : index
    %c0_51 = arith.constant 0 : index
    %c0_52 = arith.constant 0 : index
    %39 = vector.load %arg3[%c0_50, %c5, %c0_51, %c0_52] : memref<1x9x4x8xf32, #tpu.memory_space<vmem>>, vector<1x1x4x8xf32>
    %40 = vector.shape_cast %39 : vector<1x1x4x8xf32> to vector<4x8xf32>
    %cst_53 = arith.constant dense<0.000000e+00> : vector<256x8xf32>
    %41 = tpu.matmul %38, %40, %cst_53 {dimension_numbers = #tpu.dot_dimension_numbers<[1], [0], [0], [1], [0, 0, 1, 1], [], []>} : vector<256x4xf32>, vector<4x8xf32>, vector<256x8xf32> -> vector<256x8xf32>
    %42 = arith.addf %35, %41 : vector<256x8xf32>
    %c0_54 = arith.constant 0 : index
    %c0_55 = arith.constant 0 : index
    %c2_56 = arith.constant 2 : index
    %c0_57 = arith.constant 0 : index
    %c0_58 = arith.constant 0 : index
    %43 = vector.load %arg2[%c0_54, %c0_55, %c2_56, %c0_57, %c0_58] : memref<1x1x18x18x4xf32, #tpu.memory_space<vmem>>, vector<1x1x16x16x4xf32>
    %44 = vector.shape_cast %43 : vector<1x1x16x16x4xf32> to vector<16x16x4xf32>
    %45 = vector.shape_cast %44 : vector<16x16x4xf32> to vector<256x4xf32>
    %c0_59 = arith.constant 0 : index
    %c6 = arith.constant 6 : index
    %c0_60 = arith.constant 0 : index
    %c0_61 = arith.constant 0 : index
    %46 = vector.load %arg3[%c0_59, %c6, %c0_60, %c0_61] : memref<1x9x4x8xf32, #tpu.memory_space<vmem>>, vector<1x1x4x8xf32>
    %47 = vector.shape_cast %46 : vector<1x1x4x8xf32> to vector<4x8xf32>
    %cst_62 = arith.constant dense<0.000000e+00> : vector<256x8xf32>
    %48 = tpu.matmul %45, %47, %cst_62 {dimension_numbers = #tpu.dot_dimension_numbers<[1], [0], [0], [1], [0, 0, 1, 1], [], []>} : vector<256x4xf32>, vector<4x8xf32>, vector<256x8xf32> -> vector<256x8xf32>
    %49 = arith.addf %42, %48 : vector<256x8xf32>
    %c0_63 = arith.constant 0 : index
    %c0_64 = arith.constant 0 : index
    %c2_65 = arith.constant 2 : index
    %c1_66 = arith.constant 1 : index
    %c0_67 = arith.constant 0 : index
    %50 = vector.load %arg2[%c0_63, %c0_64, %c2_65, %c1_66, %c0_67] : memref<1x1x18x18x4xf32, #tpu.memory_space<vmem>>, vector<1x1x16x16x4xf32>
    %51 = vector.shape_cast %50 : vector<1x1x16x16x4xf32> to vector<16x16x4xf32>
    %52 = vector.shape_cast %51 : vector<16x16x4xf32> to vector<256x4xf32>
    %c0_68 = arith.constant 0 : index
    %c7 = arith.constant 7 : index
    %c0_69 = arith.constant 0 : index
    %c0_70 = arith.constant 0 : index
    %53 = vector.load %arg3[%c0_68, %c7, %c0_69, %c0_70] : memref<1x9x4x8xf32, #tpu.memory_space<vmem>>, vector<1x1x4x8xf32>
    %54 = vector.shape_cast %53 : vector<1x1x4x8xf32> to vector<4x8xf32>
    %cst_71 = arith.constant dense<0.000000e+00> : vector<256x8xf32>
    %55 = tpu.matmul %52, %54, %cst_71 {dimension_numbers = #tpu.dot_dimension_numbers<[1], [0], [0], [1], [0, 0, 1, 1], [], []>} : vector<256x4xf32>, vector<4x8xf32>, vector<256x8xf32> -> vector<256x8xf32>
    %56 = arith.addf %49, %55 : vector<256x8xf32>
    %c0_72 = arith.constant 0 : index
    %c0_73 = arith.constant 0 : index
    %c2_74 = arith.constant 2 : index
    %c2_75 = arith.constant 2 : index
    %c0_76 = arith.constant 0 : index
    %57 = vector.load %arg2[%c0_72, %c0_73, %c2_74, %c2_75, %c0_76] : memref<1x1x18x18x4xf32, #tpu.memory_space<vmem>>, vector<1x1x16x16x4xf32>
    %58 = vector.shape_cast %57 : vector<1x1x16x16x4xf32> to vector<16x16x4xf32>
    %59 = vector.shape_cast %58 : vector<16x16x4xf32> to vector<256x4xf32>
    %c0_77 = arith.constant 0 : index
    %c8 = arith.constant 8 : index
    %c0_78 = arith.constant 0 : index
    %c0_79 = arith.constant 0 : index
    %60 = vector.load %arg3[%c0_77, %c8, %c0_78, %c0_79] : memref<1x9x4x8xf32, #tpu.memory_space<vmem>>, vector<1x1x4x8xf32>
    %61 = vector.shape_cast %60 : vector<1x1x4x8xf32> to vector<4x8xf32>
    %cst_80 = arith.constant dense<0.000000e+00> : vector<256x8xf32>
    %62 = tpu.matmul %59, %61, %cst_80 {dimension_numbers = #tpu.dot_dimension_numbers<[1], [0], [0], [1], [0, 0, 1, 1], [], []>} : vector<256x4xf32>, vector<4x8xf32>, vector<256x8xf32> -> vector<256x8xf32>
    %63 = arith.addf %56, %62 : vector<256x8xf32>
    %c0_81 = arith.constant 0 : index
    %c0_82 = arith.constant 0 : index
    %c0_83 = arith.constant 0 : index
    %c0_84 = arith.constant 0 : index
    %64 = vector.load %arg4[%c0_81, %c0_82, %c0_83, %c0_84] : memref<1x1x256x8xf32, #tpu.memory_space<vmem>>, vector<1x1x256x8xf32>
    %65 = vector.shape_cast %64 : vector<1x1x256x8xf32> to vector<256x8xf32>
    %66 = vector.shape_cast %63 : vector<256x8xf32> to vector<1x1x256x8xf32>
    tpu.vector_store %arg4[%c0_81, %c0_82, %c0_83, %c0_84], %66 {strides = array<i32>} : memref<1x1x256x8xf32, #tpu.memory_space<vmem>>, vector<1x1x256x8xf32>,
    %cst_85 = arith.constant dense<0.000000e+00> : vector<8xf32>
    %67 = vector.multi_reduction <add>, %63, %cst_85 [0] : vector<256x8xf32> to vector<8xf32>
    %68 = vector.shape_cast %67 : vector<8xf32> to vector<1x8xf32>
    %69 = arith.mulf %63, %63 : vector<256x8xf32>
    %cst_86 = arith.constant dense<0.000000e+00> : vector<8xf32>
    %70 = vector.multi_reduction <add>, %69, %cst_86 [0] : vector<256x8xf32> to vector<8xf32>
    %71 = vector.shape_cast %70 : vector<8xf32> to vector<1x8xf32>
    %72 = tpu.concatenate %68, %71 in 0 : vector<1x8xf32>, vector<1x8xf32> -> vector<2x8xf32>
    %c0_87 = arith.constant 0 : index
    %c0_88 = arith.constant 0 : index
    %c0_89 = arith.constant 0 : index
    %c0_90 = arith.constant 0 : index
    %73 = vector.load %arg5[%c0_87, %c0_88, %c0_89, %c0_90] : memref<1x1x2x8xf32, #tpu.memory_space<vmem>>, vector<1x1x2x8xf32>
    %74 = vector.shape_cast %73 : vector<1x1x2x8xf32> to vector<2x8xf32>
    %75 = vector.shape_cast %72 : vector<2x8xf32> to vector<1x1x2x8xf32>
    tpu.vector_store %arg5[%c0_87, %c0_88, %c0_89, %c0_90], %75 {strides = array<i32>} : memref<1x1x2x8xf32, #tpu.memory_space<vmem>>, vector<1x1x2x8xf32>,
    return
  }
  func.func @transform_0(%arg0: i32, %arg1: i32) -> (i32, i32, i32, i32, i32) {
    %c0_i32 = arith.constant 0 : i32
    %c0_i32_0 = arith.constant 0 : i32
    %c0_i32_1 = arith.constant 0 : i32
    %c0_i32_2 = arith.constant 0 : i32
    return %arg1, %arg0, %c0_i32, %c0_i32_0, %c0_i32_1 : i32, i32, i32, i32, i32
  }
  func.func @transform_1(%arg0: i32, %arg1: i32) -> (i32, i32, i32, i32) {
    %c0_i32 = arith.constant 0 : i32
    %c0_i32_0 = arith.constant 0 : i32
    %c0_i32_1 = arith.constant 0 : i32
    %c0_i32_2 = arith.constant 0 : i32
    return %arg0, %c0_i32, %c0_i32_0, %c0_i32_1 : i32, i32, i32, i32
  }
  func.func @transform_2(%arg0: i32, %arg1: i32) -> (i32, i32, i32, i32) {
    %c0_i32 = arith.constant 0 : i32
    %c0_i32_0 = arith.constant 0 : i32
    %c0_i32_1 = arith.constant 0 : i32
    return %arg0, %arg1, %c0_i32, %c0_i32_0 : i32, i32, i32, i32
  }
  func.func @transform_3(%arg0: i32, %arg1: i32) -> (i32, i32, i32, i32) {
    %c0_i32 = arith.constant 0 : i32
    %c0_i32_0 = arith.constant 0 : i32
    %c0_i32_1 = arith.constant 0 : i32
    return %arg0, %arg1, %c0_i32, %c0_i32_0 : i32, i32, i32, i32
  }
}

</mosaic_0001>

<bundles_post_ra>
// kernel: tpu_custom_call.1
= control target key start
LH: loop header
LB: loop body
LE: loop exit
PB: predicated region body
PF: predicated region fallthrough
CT: control target
= control target key end

     0   :  { %9 = vsyncpa [#allocation3], 0  ;;  %s7148_s0 = inlined_call_operand.vmem [shape: f32[2,1,18,18,4], index: 0, kind: input, shape index: {}]   ;;  %s7149_s1 = inlined_call_operand.vmem [shape: f32[1,9,4,8], index: 1, kind: input, shape index: {}]   ;;  %s7150_s2 = inlined_call_operand.vmem [shape: f32[1,2,256,8], index: 2, kind: output, shape index: {0}]   ;;  %s7151_s3 = inlined_call_operand.hbm [shape: f32[1,2,2,8], index: 3, kind: output, shape index: {1}]  }
   0x1   :  { %11 = vsyncpa [#allocation3 + $0x1], 0  ;;  %s5474_s12 = smov 0   ;;  %s5476_s13 = smov 0  }
   0x2   :  { %s5478_s14 = smov 0   ;;  %s5480_s15 = smov 0  }
   0x3   :  { %s5482_s16 = smov 0   ;;  %s5484_s17 = smov 0  }
   0x4 LB: > { %s4058_s18 = sadd.s32 4294967295, %s5451_s17   ;;  %s4059_s19 = sadd.s32 4294967294, %s5451_s17   ;;  %s5451_s17 = sphi %s5484_s17, %s17_s17   ;;  %s5447_s16 = sphi %s5482_s16, %s7382_s16   ;;  %s5443_s15 = sphi %s5480_s15, %s7381_s15   ;;  %s5439_s14 = sphi %s5478_s14, %s7380_s14   ;;  %s5435_s13 = sphi %s5476_s13, %s7379_s13   ;;  %s5431_s12 = sphi %s5474_s12, %s7378_s12  }
   0x5   : > { %s26_s20 = sadd.s32 1, %s5447_s16  ;;  %s120_s21 = sadd.s32 1, %s5439_s14 }
   0x6   : > { %p27_p0 = scmp.ge.s32.totalorder %s26_s20, 2  ;;  %p130_p1 = scmp.ne.s32.totalorder %s5439_s14, %s5435_s13 }
   0x7   : > { %p131_p2 = scmp.eq.s32.totalorder %s4058_s18, 1  ;;  %p136_p3 = scmp.ne.s32.totalorder %s5435_s13, %s5431_s12 }
   0x8   : > { %s7384_s20 = smov (%p27_p0, %s26_s20), 0  ;;  %p137_p5 = scmp.eq.s32.totalorder %s4059_s19, 1 }
   0x9   : > { %p5514_p4 = por %p131_p2, %p130_p1  ;;  %s116_s23 = ssub.s32 %s5447_s16, %s7384_s20 }
   0xa   : > { %p4063_p6 = scmp.ge.s32.totalorder %s5451_s17, 1  ;;  %p118_p7 = scmp.eq.s32.totalorder %s116_s23, 0 }
   0xb   : > { %p5521_p8 = por %p137_p5, %p136_p3  ;;  %p175_p9 = scmp.lt.s32.totalorder %s5451_s17, 3 }
   0xc   : > { %s5527_s25 = scalar_select %p118_p7, %s5439_s14, %s120_s21  }
   0xd   : > { %p176_p10 = pnand %p4063_p6, %p175_p9 }
   0xf   : > { %179 = sbr.rel (%p176_p10) target bundleno = 546 (0x222), region = 28 }
  0x14   : > { %v4068_v0 = vld [vmem:[%s7149_s1 + $0x4] sm:$0xf]  ;;  %vm404_vm0 = vcmask 1043456   ;;  %p217_p11 = scmp.lt.s32.totalorder %s5443_s15, 1  ;;  %v272_v1 = vld [vmem:[%s7149_s1] sm:$0xf] }
  0x15   : > { %5317 = vmatprep.subr.msk.mxu1 %vm404_vm0, %v4068_v0  ;;  %4867 = vmatprep.subr.msk.mxu0 %vm404_vm0, %v4068_v0  ;;  %v4135_v2 = vld [vmem:[%s7149_s1 + $0x8] sm:$0xf]  ;;  %vm307_vm1 = vcmask 31744   ;;  %v5577_v9 = vld [vmem:[%s7149_s1 + $0xc] sm:$0xf]  ;;  %vm3689_vm2 = vcmask 64512  }
  0x16   : > { %5318 = vmatpush3.msk.msra.mxu1 %vm404_vm0, %v4068_v0  ;;  %4868 = vmatpush3.msk.msra.mxu0 %vm404_vm0, %v4068_v0  ;;  %s5544_s5 = scalar_select %p217_p11, %s5443_s15, 1  ;;  %v5582_v10 = vld [vmem:[%s7149_s1 + $0x10] sm:$0xf]  ;;  %v5741_v43 = vld [vmem:[%s7149_s1 + $0x14] sm:$0xf]  ;;  %vm3892_vm3 = vcmask 1040384  }
  0x17   : > { %4917 = vmatprep.subr.msk.mxu1 %vm404_vm0, %v272_v1  ;;  %4967 = vmatprep.subr.msk.mxu0 %vm404_vm0, %v4135_v2  ;;  %v5746_v44 = vld [vmem:[%s7149_s1 + $0x18] sm:$0xf]  ;;  %s4566_s11 = sshll.u32 %s5443_s15, 5  ;;  %vm3894_vm4 = vcmask 58368   ;;  %s5453_s15 = smov [#allocation2]  }
  0x18   : > { %s5319_s6 = smul.u32 432, %s5544_s5  ;;  %s7108_s26 = scalar_lea.hbm %s7151_s3, %s4566_s11 }
  0x19   : > { %s5379_s29 = sshll.u32 %s5453_s15, 4  ;;  %s5380_s29 = int_to_ptr.vmem [resolvable:$false] %s5379_s29 }
  0x1a   : > { %s5552_s9 = scalar_lea.vmem %s7148_s0, %s5319_s6  ;;  %s4569_s6 = sshll.u32 %s5544_s5, 8 }
  0x1b   : > { %v273_v3 = vld [vmem:[%s5552_s9 + $0x1] sm:$0xff]  ;;  %v274_v5 = vld [vmem:[%s5552_s9 + $0x9] sm:$0xff]  ;;  %v5566_v7 = vld [vmem:[%s5552_s9 + $0x19] sm:$0xff]  ;;  %s6855_s8 = scalar_lea.vmem %s7150_s2, %s4569_s6  ;;  %s5381_s30 = scalar_lea.vmem %s5380_s29, 64 }
  0x1c   : > { %v5556_v4 = vld [vmem:[%s5552_s9 + $0xc1] sm:$0xff]  ;;  %4869 = vmatprep.mubr.msk.f32.mxu0 %vm307_vm1, %v273_v3  ;;  %v5563_v6 = vld [vmem:[%s5552_s9 + $0xc9] sm:$0xff]  ;;  %v5569_v8 = vld [vmem:[%s5552_s9 + $0xd9] sm:$0xff] }
  0x1d   : > { %4893 = vmatprep.mubr.msk.f32.mxu1 %vm307_vm1, %v5556_v4  ;;  %4870 = vmatmul.mubr.msk.f32.vlgmr.msra.gmra.mxu0 %vm307_vm1, %v274_v5  ;;  %v5587_v11 = vld [vmem:[%s5552_s9 + $0x21] sm:$0xff]  ;;  %v5597_v13 = vld [vmem:[%s5552_s9 + $0x31] sm:$0xff]  ;;  %v5615_v15 = vld [vmem:[%s5552_s9 + $0x39] sm:$0xff] }
  0x1e   : > { %4894 = vmatmul.mubr.msk.f32.vlgmr.msra.gmra.mxu1 %vm307_vm1, %v5563_v6  ;;  %4968 = vmatpush3.msk.msra.mxu0 %vm404_vm0, %v4135_v2  ;;  %v5590_v12 = vld [vmem:[%s5552_s9 + $0xe1] sm:$0xff]  ;;  %v5600_v14 = vld [vmem:[%s5552_s9 + $0xf1] sm:$0xff]  ;;  %v5618_v16 = vld [vmem:[%s5552_s9 + $0xf9] sm:$0xff] }
  0x1f   : > { %4918 = vmatpush3.msk.msra.mxu1 %vm404_vm0, %v272_v1  ;;  %4872 = vmatprep.mubr.msk.f32.mxu0 %vm307_vm1, %v5566_v7  ;;  %v5621_v17 = vld [vmem:[%s5552_s9 + $0x49] sm:$0xff]  ;;  %v5635_v19 = vld [vmem:[%s5552_s9 + $0x51] sm:$0xff]  ;;  %v5641_v21 = vld [vmem:[%s5552_s9 + $0x61] sm:$0xff] }
  0x20   : > { %4896 = vmatprep.mubr.msk.f32.mxu1 %vm307_vm1, %v5569_v8  ;;  %5017 = vmatprep.subr.msk.mxu1 %vm404_vm0, %v5577_v9  ;;  %v5624_v18 = vld [vmem:[%s5552_s9 + $0x109] sm:$0xff]  ;;  %v5638_v20 = vld [vmem:[%s5552_s9 + $0x111] sm:$0xff]  ;;  %v5644_v22 = vld [vmem:[%s5552_s9 + $0x121] sm:$0xff] }
  0x21   : > { %5067 = vmatprep.subr.msk.mxu0 %vm404_vm0, %v5582_v10  ;;  %4873 = vmatmul.mubr.msk.f32.gmra.mxu0 %vm307_vm1, %v5587_v11  ;;  %v5655_v23 = vld [vmem:[%s5552_s9 + $0x69] sm:$0xff]  ;;  %v5661_v25 = vld [vmem:[%s5552_s9 + $0x79] sm:$0xff]  ;;  %v5675_v27 = vld [vmem:[%s5552_s9 + $0x81] sm:$0xff] }
  0x22   : > { %4897 = vmatmul.mubr.msk.f32.gmra.mxu1 %vm307_vm1, %v5590_v12  ;;  %4875 = vmatprep.mubr.msk.f32.mxu0 %vm307_vm1, %v5597_v13  ;;  %v5658_v24 = vld [vmem:[%s5552_s9 + $0x129] sm:$0xff]  ;;  %v5664_v26 = vld [vmem:[%s5552_s9 + $0x139] sm:$0xff]  ;;  %v5678_v28 = vld [vmem:[%s5552_s9 + $0x141] sm:$0xff] }
  0x23   : > { %4899 = vmatprep.mubr.msk.f32.mxu1 %vm307_vm1, %v5600_v14  ;;  %v5681_v29 = vld [vmem:[%s5552_s9 + $0x91] sm:$0xff]  ;;  %v5695_v31 = vld [vmem:[%s5552_s9 + $0x99] sm:$0xff]  ;;  %v5701_v33 = vld [vmem:[%s5552_s9 + $0xa9] sm:$0xff] }
  0x24   : > { %v5684_v30 = vld [vmem:[%s5552_s9 + $0x151] sm:$0xff]  ;;  %v5698_v32 = vld [vmem:[%s5552_s9 + $0x159] sm:$0xff]  ;;  %v5704_v34 = vld [vmem:[%s5552_s9 + $0x169] sm:$0xff] }
  0x25   : > { %4876 = vmatmul.mubr.msk.f32.gmra.mxu0 %vm307_vm1, %v5615_v15  ;;  %v5715_v35 = vld [vmem:[%s5552_s9 + $0xb1] sm:$0xff]  ;;  %v240_v37 = vld [vmem:[%s5552_s9] sm:$0xff]  ;;  %v241_v39 = vld [vmem:[%s5552_s9 + $0x8] sm:$0xff] }
  0x26   : > { %4900 = vmatmul.mubr.msk.f32.gmra.mxu1 %vm307_vm1, %v5618_v16  ;;  %4878 = vmatprep.mubr.msk.f32.mxu0 %vm307_vm1, %v5621_v17  ;;  %v5718_v36 = vld [vmem:[%s5552_s9 + $0x171] sm:$0xff]  ;;  %v957_v38 = vld [vmem:[%s5552_s9 + $0x2] sm:$0xff]  ;;  %v5734_v42 = vld [vmem:[%s5552_s9 + $0x1a] sm:$0xff] }
  0x27   : > { %4902 = vmatprep.mubr.msk.f32.mxu1 %vm307_vm1, %v5624_v18  ;;  %7214 = vst [vmem:[#allocation5_spill] sm:$0xff] %v5718_v36  ;;  %v958_v40 = vld [vmem:[%s5552_s9 + $0xa] sm:$0xff]  ;;  %v5731_v41 = vld [vmem:[%s5552_s9 + $0x18] sm:$0xff]  ;;  %7215 = vst [vmem:[#allocation6_spill] sm:$0xff] %v5734_v42 }
  0x28   : > { %v5753_v45 = vld [vmem:[%s5552_s9 + $0x20] sm:$0xff]  ;;  %v5763_v47 = vld [vmem:[%s5552_s9 + $0x30] sm:$0xff]  ;;  %v5781_v49 = vld [vmem:[%s5552_s9 + $0x38] sm:$0xff] }
  0x29   : > { %4879 = vmatmul.mubr.msk.f32.gmra.mxu0 %vm307_vm1, %v5635_v19  ;;  %v5756_v46 = vld [vmem:[%s5552_s9 + $0x22] sm:$0xff]  ;;  %v5766_v48 = vld [vmem:[%s5552_s9 + $0x32] sm:$0xff]  ;;  %v5784_v50 = vld [vmem:[%s5552_s9 + $0x3a] sm:$0xff] }
  0x2a   : > { %4903 = vmatmul.mubr.msk.f32.gmra.mxu1 %vm307_vm1, %v5638_v20  ;;  %4881 = vmatprep.mubr.msk.f32.mxu0 %vm307_vm1, %v5641_v21  ;;  %7216 = vst [vmem:[#allocation7_spill] sm:$0xff] %v5756_v46  ;;  %7217 = vst [vmem:[#allocation8_spill] sm:$0xff] %v5766_v48  ;;  %v5787_v51 = vld [vmem:[%s5552_s9 + $0x48] sm:$0xff]  ;;  %v5801_v53 = vld [vmem:[%s5552_s9 + $0x50] sm:$0xff] }
  0x2b   : > { %4905 = vmatprep.mubr.msk.f32.mxu1 %vm307_vm1, %v5644_v22  ;;  %7218 = vst [vmem:[#allocation9_spill] sm:$0xff] %v5784_v50  ;;  %v5790_v52 = vld [vmem:[%s5552_s9 + $0x4a] sm:$0xff]  ;;  %v5804_v54 = vld [vmem:[%s5552_s9 + $0x52] sm:$0xff]  ;;  %v5807_v55 = vld [vmem:[%s5552_s9 + $0x60] sm:$0xff] }
  0x2c   : > { %7219 = vst [vmem:[#allocation10_spill] sm:$0xff] %v5790_v52  ;;  %7220 = vst [vmem:[#allocation11_spill] sm:$0xff] %v5804_v54  ;;  %v5810_v56 = vld [vmem:[%s5552_s9 + $0x62] sm:$0xff]  ;;  %v5824_v58 = vld [vmem:[%s5552_s9 + $0x6a] sm:$0xff] }
  0x2d   : > { %4882 = vmatmul.mubr.msk.f32.gmra.mxu0 %vm307_vm1, %v5655_v23  ;;  %7221 = vst [vmem:[#allocation12_spill] sm:$0xff] %v5810_v56  ;;  %v5821_v57 = vld [vmem:[%s5552_s9 + $0x68] sm:$0xff]  ;;  %7222 = vst [vmem:[#allocation13_spill] sm:$0xff] %v5824_v58  ;;  %v5827_v59 = vld [vmem:[%s5552_s9 + $0x78] sm:$0xff] }
  0x2e   : > { %4906 = vmatmul.mubr.msk.f32.gmra.mxu1 %vm307_vm1, %v5658_v24  ;;  %4884 = vmatprep.mubr.msk.f32.mxu0 %vm307_vm1, %v5661_v25  ;;  %v5830_v60 = vld [vmem:[%s5552_s9 + $0x7a] sm:$0xff]  ;;  %v5844_v62 = vld [vmem:[%s5552_s9 + $0x82] sm:$0xff]  ;;  %v5847_v63 = vld [vmem:[%s5552_s9 + $0x90] sm:$0xff] }
  0x2f   : > { %4908 = vmatprep.mubr.msk.f32.mxu1 %vm307_vm1, %v5664_v26  ;;  %7223 = vst [vmem:[#allocation14_spill] sm:$0xff] %v5830_v60  ;;  %v5841_v61 = vld [vmem:[%s5552_s9 + $0x80] sm:$0xff]  ;;  %7224 = vst [vmem:[#allocation15_spill] sm:$0xff] %v5844_v62  ;;  %v5850_v0 = vld [vmem:[%s5552_s9 + $0x92] sm:$0xff] }
  0x30   : > { %7225 = vst [vmem:[#allocation16_spill] sm:$0xff] %v5850_v0  ;;  %v5861_v1 = vld [vmem:[%s5552_s9 + $0x98] sm:$0xff]  ;;  %v5867_v3 = vld [vmem:[%s5552_s9 + $0xa8] sm:$0xff] }
  0x31   : > { %4885 = vmatmul.mubr.msk.f32.gmra.mxu0 %vm307_vm1, %v5675_v27  ;;  %v5864_v2 = vld [vmem:[%s5552_s9 + $0x9a] sm:$0xff]  ;;  %v5870_v5 = vld [vmem:[%s5552_s9 + $0xaa] sm:$0xff] }
  0x32   : > { %4909 = vmatmul.mubr.msk.f32.gmra.mxu1 %vm307_vm1, %v5678_v28  ;;  %4887 = vmatprep.mubr.msk.f32.mxu0 %vm307_vm1, %v5681_v29  ;;  %7226 = vst [vmem:[#allocation17_spill] sm:$0xff] %v5864_v2  ;;  %7227 = vst [vmem:[#allocation18_spill] sm:$0xff] %v5870_v5 }
  0x33   : > { %4911 = vmatprep.mubr.msk.f32.mxu1 %vm307_vm1, %v5684_v30 }
  0x35   : > { %4888 = vmatmul.mubr.msk.f32.gmra.mxu0 %vm307_vm1, %v5695_v31 }
  0x36   : > { %4912 = vmatmul.mubr.msk.f32.gmra.mxu1 %vm307_vm1, %v5698_v32  ;;  %4890 = vmatprep.mubr.msk.f32.mxu0 %vm307_vm1, %v5701_v33 }
  0x37   : > { %4914 = vmatprep.mubr.msk.f32.mxu1 %vm307_vm1, %v5704_v34 }
  0x39   : > { %4891 = vmatmul.mubr.msk.f32.gmra.mxu0 %vm307_vm1, %v5715_v35 }
  0x3a   : > { %4915 = vmatmul.mubr.msk.f32.gmra.mxu1 %vm307_vm1, %v5718_v36  ;;  %4969 = vmatprep.mubr.msk.f32.mxu0 %vm307_vm1, %v957_v38  ;;  %v5890_v38 = vld [vmem:[%s5552_s9 + $0xc2] sm:$0xff]  ;;  %v6030_v36 = vld [vmem:[%s5552_s9 + $0x16a] sm:$0xff] }
  0x3b   : > { %4919 = vmatprep.mubr.msk.f32.mxu1 %vm307_vm1, %v240_v37  ;;  %v5887_v37 = vld [vmem:[%s5552_s9 + $0xc0] sm:$0xff]  ;;  %7229 = vst [vmem:[#allocation20_spill] sm:$0xff] %v5890_v38  ;;  %7243 = vst [vmem:[#allocation34_spill] sm:$0xff] %v6030_v36 }
  0x3d   : > { %4970 = vmatmul.mubr.msk.f32.vlgmr.msra.gmra.mxu0 %vm307_vm1, %v958_v40  ;;  %v5904_v40 = vld [vmem:[%s5552_s9 + $0xca] sm:$0xff] }
  0x3e   : > { %4920 = vmatmul.mubr.msk.f32.vlgmr.msra.gmra.mxu1 %vm307_vm1, %v241_v39  ;;  %5068 = vmatpush3.msk.msra.mxu0 %vm404_vm0, %v5582_v10  ;;  %v5884_v10 = vld [vmem:[%s5552_s9 + $0xb2] sm:$0xff]  ;;  %v5901_v39 = vld [vmem:[%s5552_s9 + $0xc8] sm:$0xff]  ;;  %7230 = vst [vmem:[#allocation21_spill] sm:$0xff] %v5904_v40 }
  0x3f   : > { %5018 = vmatpush3.msk.msra.mxu1 %vm404_vm0, %v5577_v9  ;;  %4922 = vmatprep.mubr.msk.f32.mxu1 %vm307_vm1, %v5731_v41  ;;  %v5881_v9 = vld [vmem:[%s5552_s9 + $0xb0] sm:$0xff]  ;;  %7228 = vst [vmem:[#allocation19_spill] sm:$0xff] %v5884_v10 }
  0x40   : > { %4972 = vmatprep.mubr.msk.f32.mxu0 %vm307_vm1, %v5734_v42  ;;  %5117 = vmatprep.subr.msk.mxu1 %vm404_vm0, %v5741_v43  ;;  %v6027_v42 = vld [vmem:[%s5552_s9 + $0x168] sm:$0xff] }
  0x41   : > { %5167 = vmatprep.subr.msk.mxu0 %vm404_vm0, %v5746_v44  ;;  %4973 = vmatmul.mubr.msk.f32.gmra.mxu0 %vm307_vm1, %v5756_v46  ;;  %v6010_v46 = vld [vmem:[%s5552_s9 + $0x152] sm:$0xff] }
  0x42   : > { %4923 = vmatmul.mubr.msk.f32.gmra.mxu1 %vm307_vm1, %v5753_v45  ;;  %4975 = vmatprep.mubr.msk.f32.mxu0 %vm307_vm1, %v5766_v48  ;;  %v6007_v48 = vld [vmem:[%s5552_s9 + $0x150] sm:$0xff]  ;;  %7241 = vst [vmem:[#allocation32_spill] sm:$0xff] %v6010_v46 }
  0x43   : > { %4925 = vmatprep.mubr.msk.f32.mxu1 %vm307_vm1, %v5763_v47 }
  0x45   : > { %4976 = vmatmul.mubr.msk.f32.gmra.mxu0 %vm307_vm1, %v5784_v50  ;;  %v5990_v50 = vld [vmem:[%s5552_s9 + $0x13a] sm:$0xff] }
  0x46   : > { %4926 = vmatmul.mubr.msk.f32.gmra.mxu1 %vm307_vm1, %v5781_v49  ;;  %4978 = vmatprep.mubr.msk.f32.mxu0 %vm307_vm1, %v5790_v52  ;;  %v5987_v52 = vld [vmem:[%s5552_s9 + $0x138] sm:$0xff]  ;;  %7239 = vst [vmem:[#allocation30_spill] sm:$0xff] %v5990_v50 }
  0x47   : > { %4928 = vmatprep.mubr.msk.f32.mxu1 %vm307_vm1, %v5787_v51 }
  0x49   : > { %4979 = vmatmul.mubr.msk.f32.gmra.mxu0 %vm307_vm1, %v5804_v54  ;;  %v5970_v54 = vld [vmem:[%s5552_s9 + $0x122] sm:$0xff] }
  0x4a   : > { %4929 = vmatmul.mubr.msk.f32.gmra.mxu1 %vm307_vm1, %v5801_v53  ;;  %4981 = vmatprep.mubr.msk.f32.mxu0 %vm307_vm1, %v5810_v56  ;;  %v5967_v56 = vld [vmem:[%s5552_s9 + $0x120] sm:$0xff]  ;;  %7237 = vst [vmem:[#allocation28_spill] sm:$0xff] %v5970_v54 }
  0x4b   : > { %4931 = vmatprep.mubr.msk.f32.mxu1 %vm307_vm1, %v5807_v55 }
  0x4d   : > { %4982 = vmatmul.mubr.msk.f32.gmra.mxu0 %vm307_vm1, %v5824_v58  ;;  %v5950_v58 = vld [vmem:[%s5552_s9 + $0x10a] sm:$0xff] }
  0x4e   : > { %4932 = vmatmul.mubr.msk.f32.gmra.mxu1 %vm307_vm1, %v5821_v57  ;;  %4984 = vmatprep.mubr.msk.f32.mxu0 %vm307_vm1, %v5830_v60  ;;  %v5947_v60 = vld [vmem:[%s5552_s9 + $0x108] sm:$0xff]  ;;  %7235 = vst [vmem:[#allocation26_spill] sm:$0xff] %v5950_v58 }
  0x4f   : > { %4934 = vmatprep.mubr.msk.f32.mxu1 %vm307_vm1, %v5827_v59 }
  0x51   : > { %4985 = vmatmul.mubr.msk.f32.gmra.mxu0 %vm307_vm1, %v5844_v62  ;;  %v5930_v62 = vld [vmem:[%s5552_s9 + $0xf2] sm:$0xff] }
  0x52   : > { %4935 = vmatmul.mubr.msk.f32.gmra.mxu1 %vm307_vm1, %v5841_v61  ;;  %4987 = vmatprep.mubr.msk.f32.mxu0 %vm307_vm1, %v5850_v0  ;;  %v5927_v0 = vld [vmem:[%s5552_s9 + $0xf0] sm:$0xff]  ;;  %7233 = vst [vmem:[#allocation24_spill] sm:$0xff] %v5930_v62 }
  0x53   : > { %4937 = vmatprep.mubr.msk.f32.mxu1 %vm307_vm1, %v5847_v63 }
  0x55   : > { %4988 = vmatmul.mubr.msk.f32.gmra.mxu0 %vm307_vm1, %v5864_v2  ;;  %v5910_v2 = vld [vmem:[%s5552_s9 + $0xda] sm:$0xff] }
  0x56   : > { %4938 = vmatmul.mubr.msk.f32.gmra.mxu1 %vm307_vm1, %v5861_v1  ;;  %4990 = vmatprep.mubr.msk.f32.mxu0 %vm307_vm1, %v5870_v5  ;;  %v5907_v5 = vld [vmem:[%s5552_s9 + $0xd8] sm:$0xff]  ;;  %7231 = vst [vmem:[#allocation22_spill] sm:$0xff] %v5910_v2 }
  0x57   : > { %4940 = vmatprep.mubr.msk.f32.mxu1 %vm307_vm1, %v5867_v3 }
  0x59   : > { %4991 = vmatmul.mubr.msk.f32.gmra.mxu0 %vm307_vm1, %v5884_v10  ;;  %v5924_v10 = vld [vmem:[%s5552_s9 + $0xe2] sm:$0xff] }
  0x5a   : > { %4941 = vmatmul.mubr.msk.f32.gmra.mxu1 %vm307_vm1, %v5881_v9  ;;  %4993 = vmatprep.mubr.msk.f32.mxu0 %vm307_vm1, %v5890_v38  ;;  %v5921_v38 = vld [vmem:[%s5552_s9 + $0xe0] sm:$0xff]  ;;  %7232 = vst [vmem:[#allocation23_spill] sm:$0xff] %v5924_v10 }
  0x5b   : > { %4943 = vmatprep.mubr.msk.f32.mxu1 %vm307_vm1, %v5887_v37 }
  0x5d   : > { %4994 = vmatmul.mubr.msk.f32.gmra.mxu0 %vm307_vm1, %v5904_v40  ;;  %v5944_v40 = vld [vmem:[%s5552_s9 + $0xfa] sm:$0xff] }
  0x5e   : > { %4944 = vmatmul.mubr.msk.f32.gmra.mxu1 %vm307_vm1, %v5901_v39  ;;  %4996 = vmatprep.mubr.msk.f32.mxu0 %vm307_vm1, %v5910_v2  ;;  %v5941_v2 = vld [vmem:[%s5552_s9 + $0xf8] sm:$0xff]  ;;  %7234 = vst [vmem:[#allocation25_spill] sm:$0xff] %v5944_v40 }
  0x5f   : > { %4946 = vmatprep.mubr.msk.f32.mxu1 %vm307_vm1, %v5907_v5 }
  0x61   : > { %4997 = vmatmul.mubr.msk.f32.gmra.mxu0 %vm307_vm1, %v5924_v10  ;;  %v5964_v10 = vld [vmem:[%s5552_s9 + $0x112] sm:$0xff] }
  0x62   : > { %4947 = vmatmul.mubr.msk.f32.gmra.mxu1 %vm307_vm1, %v5921_v38  ;;  %4999 = vmatprep.mubr.msk.f32.mxu0 %vm307_vm1, %v5930_v62  ;;  %v5961_v62 = vld [vmem:[%s5552_s9 + $0x110] sm:$0xff]  ;;  %7236 = vst [vmem:[#allocation27_spill] sm:$0xff] %v5964_v10 }
  0x63   : > { %4949 = vmatprep.mubr.msk.f32.mxu1 %vm307_vm1, %v5927_v0 }
  0x65   : > { %5000 = vmatmul.mubr.msk.f32.gmra.mxu0 %vm307_vm1, %v5944_v40  ;;  %v5984_v40 = vld [vmem:[%s5552_s9 + $0x12a] sm:$0xff] }
  0x66   : > { %4950 = vmatmul.mubr.msk.f32.gmra.mxu1 %vm307_vm1, %v5941_v2  ;;  %5002 = vmatprep.mubr.msk.f32.mxu0 %vm307_vm1, %v5950_v58  ;;  %v5981_v58 = vld [vmem:[%s5552_s9 + $0x128] sm:$0xff]  ;;  %7238 = vst [vmem:[#allocation29_spill] sm:$0xff] %v5984_v40 }
  0x67   : > { %4952 = vmatprep.mubr.msk.f32.mxu1 %vm307_vm1, %v5947_v60 }
  0x69   : > { %5003 = vmatmul.mubr.msk.f32.gmra.mxu0 %vm307_vm1, %v5964_v10  ;;  %v6004_v10 = vld [vmem:[%s5552_s9 + $0x142] sm:$0xff] }
  0x6a   : > { %4953 = vmatmul.mubr.msk.f32.gmra.mxu1 %vm307_vm1, %v5961_v62  ;;  %5005 = vmatprep.mubr.msk.f32.mxu0 %vm307_vm1, %v5970_v54  ;;  %v6001_v54 = vld [vmem:[%s5552_s9 + $0x140] sm:$0xff]  ;;  %7240 = vst [vmem:[#allocation31_spill] sm:$0xff] %v6004_v10 }
  0x6b   : > { %4955 = vmatprep.mubr.msk.f32.mxu1 %vm307_vm1, %v5967_v56 }
  0x6d   : > { %5006 = vmatmul.mubr.msk.f32.gmra.mxu0 %vm307_vm1, %v5984_v40  ;;  %v6024_v40 = vld [vmem:[%s5552_s9 + $0x15a] sm:$0xff] }
  0x6e   : > { %4956 = vmatmul.mubr.msk.f32.gmra.mxu1 %vm307_vm1, %v5981_v58  ;;  %5008 = vmatprep.mubr.msk.f32.mxu0 %vm307_vm1, %v5990_v50  ;;  %v6021_v50 = vld [vmem:[%s5552_s9 + $0x158] sm:$0xff]  ;;  %7242 = vst [vmem:[#allocation33_spill] sm:$0xff] %v6024_v40 }
  0x6f   : > { %4958 = vmatprep.mubr.msk.f32.mxu1 %vm307_vm1, %v5987_v52 }
  0x71   : > { %5009 = vmatmul.mubr.msk.f32.gmra.mxu0 %vm307_vm1, %v6004_v10  ;;  %v6044_v10 = vld [vmem:[%s5552_s9 + $0x172] sm:$0xff] }
  0x72   : > { %4959 = vmatmul.mubr.msk.f32.gmra.mxu1 %vm307_vm1, %v6001_v54  ;;  %5011 = vmatprep.mubr.msk.f32.mxu0 %vm307_vm1, %v6010_v46  ;;  %v6041_v46 = vld [vmem:[%s5552_s9 + $0x170] sm:$0xff]  ;;  %7244 = vst [vmem:[#allocation35_spill] sm:$0xff] %v6044_v10 }
  0x73   : > { %4961 = vmatprep.mubr.msk.f32.mxu1 %vm307_vm1, %v6007_v48 }
  0x75   : > { %5012 = vmatmul.mubr.msk.f32.gmra.mxu0 %vm307_vm1, %v6024_v40 }
  0x76   : > { %4962 = vmatmul.mubr.msk.f32.gmra.mxu1 %vm307_vm1, %v6021_v50  ;;  %5014 = vmatprep.mubr.msk.f32.mxu0 %vm307_vm1, %v6030_v36  ;;  %v6061_v36 = vld [vmem:[%s7149_s1 + $0x1c] sm:$0xf] }
  0x77   : > { %4964 = vmatprep.mubr.msk.f32.mxu1 %vm307_vm1, %v6027_v42 }
  0x79   : > { %5015 = vmatmul.mubr.msk.f32.gmra.mxu0 %vm307_vm1, %v6044_v10  ;;  %v6066_v10 = vld [vmem:[%s7149_s1 + $0x20] sm:$0xf] }
  0x7a   : > { %4965 = vmatmul.mubr.msk.f32.gmra.mxu1 %vm307_vm1, %v6041_v46  ;;  %5069 = vmatprep.mubr.msk.f32.mxu0 %vm307_vm1, %v5566_v7  ;;  %v7246_v7 = vld [vmem:[#allocation5_spill] sm:$0xff] }
  0x7b   : > { %5019 = vmatprep.mubr.msk.f32.mxu1 %vm307_vm1, %v5731_v41 }
  0x7d   : > { %5070 = vmatmul.mubr.msk.f32.vlgmr.msra.gmra.mxu0 %vm307_vm1, %v5587_v11  ;;  %v6202_v11 = vld [vmem:[%s5552_s9 + $0x189] sm:$0xff] }
  0x7e   : > { %5020 = vmatmul.mubr.msk.f32.vlgmr.msra.gmra.mxu1 %vm307_vm1, %v5753_v45  ;;  %5168 = vmatpush3.msk.msra.mxu0 %vm404_vm0, %v5746_v44  ;;  %7247 = vst [vmem:[#allocation5_spill] sm:$0xff] %v6202_v11  ;;  %v7265_v44 = vld [vmem:[#allocation23_spill] sm:$0xff]  ;;  %v7266_v45 = vld [vmem:[#allocation24_spill] sm:$0xff] }
  0x7f   : > { %5118 = vmatpush3.msk.msra.mxu1 %vm404_vm0, %v5741_v43  ;;  %5022 = vmatprep.mubr.msk.f32.mxu1 %vm307_vm1, %v5763_v47 }
  0x80   : > { %5072 = vmatprep.mubr.msk.f32.mxu0 %vm307_vm1, %v5597_v13  ;;  %5217 = vmatprep.subr.msk.mxu1 %vm404_vm0, %v6061_v36 }
  0x81   : > { %5267 = vmatprep.subr.msk.mxu0 %vm404_vm0, %v6066_v10  ;;  %5073 = vmatmul.mubr.msk.f32.gmra.mxu0 %vm307_vm1, %v5615_v15 }
  0x82   : > { %5023 = vmatmul.mubr.msk.f32.gmra.mxu1 %vm307_vm1, %v5781_v49  ;;  %5075 = vmatprep.mubr.msk.f32.mxu0 %vm307_vm1, %v5621_v17 }
  0x83   : > { %5025 = vmatprep.mubr.msk.f32.mxu1 %vm307_vm1, %v5787_v51 }
  0x85   : > { %5076 = vmatmul.mubr.msk.f32.gmra.mxu0 %vm307_vm1, %v5635_v19 }
  0x86   : > { %5026 = vmatmul.mubr.msk.f32.gmra.mxu1 %vm307_vm1, %v5801_v53  ;;  %5078 = vmatprep.mubr.msk.f32.mxu0 %vm307_vm1, %v5641_v21 }
  0x87   : > { %5028 = vmatprep.mubr.msk.f32.mxu1 %vm307_vm1, %v5807_v55 }
  0x89   : > { %5079 = vmatmul.mubr.msk.f32.gmra.mxu0 %vm307_vm1, %v5655_v23 }
  0x8a   : > { %5029 = vmatmul.mubr.msk.f32.gmra.mxu1 %vm307_vm1, %v5821_v57  ;;  %5081 = vmatprep.mubr.msk.f32.mxu0 %vm307_vm1, %v5661_v25 }
  0x8b   : > { %5031 = vmatprep.mubr.msk.f32.mxu1 %vm307_vm1, %v5827_v59 }
  0x8d   : > { %5082 = vmatmul.mubr.msk.f32.gmra.mxu0 %vm307_vm1, %v5675_v27 }
  0x8e   : > { %5032 = vmatmul.mubr.msk.f32.gmra.mxu1 %vm307_vm1, %v5841_v61  ;;  %5084 = vmatprep.mubr.msk.f32.mxu0 %vm307_vm1, %v5681_v29  ;;  %v7257_v29 = vld [vmem:[#allocation15_spill] sm:$0xff] }
  0x8f   : > { %5034 = vmatprep.mubr.msk.f32.mxu1 %vm307_vm1, %v5847_v63 }
  0x91   : > { %5085 = vmatmul.mubr.msk.f32.gmra.mxu0 %vm307_vm1, %v5695_v31  ;;  %v7259_v31 = vld [vmem:[#allocation17_spill] sm:$0xff] }
  0x92   : > { %5035 = vmatmul.mubr.msk.f32.gmra.mxu1 %vm307_vm1, %v5861_v1  ;;  %5087 = vmatprep.mubr.msk.f32.mxu0 %vm307_vm1, %v5701_v33  ;;  %v7261_v33 = vld [vmem:[#allocation19_spill] sm:$0xff] }
  0x93   : > { %5037 = vmatprep.mubr.msk.f32.mxu1 %vm307_vm1, %v5867_v3 }
  0x95   : > { %5088 = vmatmul.mubr.msk.f32.gmra.mxu0 %vm307_vm1, %v5715_v35  ;;  %v7263_v35 = vld [vmem:[#allocation21_spill] sm:$0xff] }
  0x96   : > { %5038 = vmatmul.mubr.msk.f32.gmra.mxu1 %vm307_vm1, %v5881_v9  ;;  %5090 = vmatprep.mubr.msk.f32.mxu0 %vm307_vm1, %v5556_v4  ;;  %v6185_v4 = vld [vmem:[%s5552_s9 + $0x180] sm:$0xff] }
  0x97   : > { %5040 = vmatprep.mubr.msk.f32.mxu1 %vm307_vm1, %v5887_v37 }
  0x99   : > { %5091 = vmatmul.mubr.msk.f32.gmra.mxu0 %vm307_vm1, %v5563_v6  ;;  %v6188_v6 = vld [vmem:[%s5552_s9 + $0x181] sm:$0xff] }
  0x9a   : > { %5041 = vmatmul.mubr.msk.f32.gmra.mxu1 %vm307_vm1, %v5901_v39  ;;  %5093 = vmatprep.mubr.msk.f32.mxu0 %vm307_vm1, %v5569_v8  ;;  %7245 = vst [vmem:[#allocation36_spill] sm:$0xff] %v6188_v6  ;;  %v6199_v8 = vld [vmem:[%s5552_s9 + $0x188] sm:$0xff] }
  0x9b   : > { %5043 = vmatprep.mubr.msk.f32.mxu1 %vm307_vm1, %v5907_v5 }
  0x9d   : > { %5094 = vmatmul.mubr.msk.f32.gmra.mxu0 %vm307_vm1, %v5590_v12  ;;  %v7248_v12 = vld [vmem:[#allocation6_spill] sm:$0xff] }
  0x9e   : > { %5044 = vmatmul.mubr.msk.f32.gmra.mxu1 %vm307_vm1, %v5921_v38  ;;  %5096 = vmatprep.mubr.msk.f32.mxu0 %vm307_vm1, %v5600_v14  ;;  %v7249_v14 = vld [vmem:[#allocation7_spill] sm:$0xff] }
  0x9f   : > { %5046 = vmatprep.mubr.msk.f32.mxu1 %vm307_vm1, %v5927_v0 }
  0xa1   : > { %5097 = vmatmul.mubr.msk.f32.gmra.mxu0 %vm307_vm1, %v5618_v16  ;;  %v7250_v16 = vld [vmem:[#allocation8_spill] sm:$0xff] }
  0xa2   : > { %5047 = vmatmul.mubr.msk.f32.gmra.mxu1 %vm307_vm1, %v5941_v2  ;;  %5099 = vmatprep.mubr.msk.f32.mxu0 %vm307_vm1, %v5624_v18  ;;  %v7251_v18 = vld [vmem:[#allocation9_spill] sm:$0xff] }
  0xa3   : > { %5049 = vmatprep.mubr.msk.f32.mxu1 %vm307_vm1, %v5947_v60 }
  0xa5   : > { %5100 = vmatmul.mubr.msk.f32.gmra.mxu0 %vm307_vm1, %v5638_v20  ;;  %v7252_v20 = vld [vmem:[#allocation10_spill] sm:$0xff] }
  0xa6   : > { %5050 = vmatmul.mubr.msk.f32.gmra.mxu1 %vm307_vm1, %v5961_v62  ;;  %5102 = vmatprep.mubr.msk.f32.mxu0 %vm307_vm1, %v5644_v22  ;;  %v7253_v22 = vld [vmem:[#allocation11_spill] sm:$0xff] }
  0xa7   : > { %5052 = vmatprep.mubr.msk.f32.mxu1 %vm307_vm1, %v5967_v56 }
  0xa9   : > { %5103 = vmatmul.mubr.msk.f32.gmra.mxu0 %vm307_vm1, %v5658_v24  ;;  %v7254_v24 = vld [vmem:[#allocation12_spill] sm:$0xff] }
  0xaa   : > { %5053 = vmatmul.mubr.msk.f32.gmra.mxu1 %vm307_vm1, %v5981_v58  ;;  %5105 = vmatprep.mubr.msk.f32.mxu0 %vm307_vm1, %v5664_v26  ;;  %v7255_v26 = vld [vmem:[#allocation13_spill] sm:$0xff] }
  0xab   : > { %5055 = vmatprep.mubr.msk.f32.mxu1 %vm307_vm1, %v5987_v52 }
  0xad   : > { %5106 = vmatmul.mubr.msk.f32.gmra.mxu0 %vm307_vm1, %v5678_v28  ;;  %v7256_v28 = vld [vmem:[#allocation14_spill] sm:$0xff] }
  0xae   : > { %5056 = vmatmul.mubr.msk.f32.gmra.mxu1 %vm307_vm1, %v6001_v54  ;;  %5108 = vmatprep.mubr.msk.f32.mxu0 %vm307_vm1, %v5684_v30  ;;  %v7258_v30 = vld [vmem:[#allocation16_spill] sm:$0xff] }
  0xaf   : > { %5058 = vmatprep.mubr.msk.f32.mxu1 %vm307_vm1, %v6007_v48 }
  0xb1   : > { %5109 = vmatmul.mubr.msk.f32.gmra.mxu0 %vm307_vm1, %v5698_v32  ;;  %v7260_v32 = vld [vmem:[#allocation18_spill] sm:$0xff] }
  0xb2   : > { %5059 = vmatmul.mubr.msk.f32.gmra.mxu1 %vm307_vm1, %v6021_v50  ;;  %5111 = vmatprep.mubr.msk.f32.mxu0 %vm307_vm1, %v5704_v34  ;;  %v7262_v34 = vld [vmem:[#allocation20_spill] sm:$0xff] }
  0xb3   : > { %5061 = vmatprep.mubr.msk.f32.mxu1 %vm307_vm1, %v6027_v42 }
  0xb5   : > { %5112 = vmatmul.mubr.msk.f32.gmra.mxu0 %vm307_vm1, %v7246_v7 }
  0xb6   : > { %5062 = vmatmul.mubr.msk.f32.gmra.mxu1 %vm307_vm1, %v6041_v46  ;;  %5114 = vmatprep.mubr.msk.f32.mxu0 %vm307_vm1, %v6188_v6  ;;  %v4397_v6 = vld [vmem:[%s5552_s9 + $0x198] sm:$0xff] }
  0xb7   : > { %5064 = vmatprep.mubr.msk.f32.mxu1 %vm307_vm1, %v6185_v4 }
  0xb9   : > { %5115 = vmatmul.mubr.msk.f32.gmra.mxu0 %vm307_vm1, %v6202_v11  ;;  %v6377_v11 = vld [vmem:[%s5552_s9 + $0x182] sm:$0xff] }
  0xba   : > { %5065 = vmatmul.mubr.msk.f32.gmra.mxu1 %vm307_vm1, %v6199_v8  ;;  %5169 = vmatprep.mubr.msk.f32.mxu0 %vm307_vm1, %v5763_v47  ;;  %7280 = vst [vmem:[#allocation10_spill] sm:$0xff] %v6377_v11 }
  0xbb   : > { %5119 = vmatprep.mubr.msk.f32.mxu1 %vm307_vm1, %v7248_v12 }
  0xbd   : > { %5170 = vmatmul.mubr.msk.f32.vlgmr.msra.gmra.mxu0 %vm307_vm1, %v5781_v49 }
  0xbe   : > { %5120 = vmatmul.mubr.msk.f32.vlgmr.msra.gmra.mxu1 %vm307_vm1, %v7249_v14  ;;  %5268 = vmatpush3.msk.msra.mxu0 %vm404_vm0, %v6066_v10 }
  0xbf   : > { %5218 = vmatpush3.msk.msra.mxu1 %vm404_vm0, %v6061_v36  ;;  %5122 = vmatprep.mubr.msk.f32.mxu1 %vm307_vm1, %v7250_v16  ;;  %v7264_v36 = vld [vmem:[#allocation22_spill] sm:$0xff] }
  0xc0   : > { %5172 = vmatprep.mubr.msk.f32.mxu0 %vm307_vm1, %v5787_v51 }
  0xc1   : > { %5173 = vmatmul.mubr.msk.f32.gmra.mxu0 %vm307_vm1, %v5801_v53 }
  0xc2   : > { %5123 = vmatmul.mubr.msk.f32.gmra.mxu1 %vm307_vm1, %v7251_v18  ;;  %5175 = vmatprep.mubr.msk.f32.mxu0 %vm307_vm1, %v5807_v55  ;;  %v7267_v55 = vld [vmem:[#allocation25_spill] sm:$0xff] }
  0xc3   : > { %5125 = vmatprep.mubr.msk.f32.mxu1 %vm307_vm1, %v7252_v20 }
  0xc5   : > { %5176 = vmatmul.mubr.msk.f32.gmra.mxu0 %vm307_vm1, %v5821_v57  ;;  %v7268_v57 = vld [vmem:[#allocation26_spill] sm:$0xff] }
  0xc6   : > { %5126 = vmatmul.mubr.msk.f32.gmra.mxu1 %vm307_vm1, %v7253_v22  ;;  %5178 = vmatprep.mubr.msk.f32.mxu0 %vm307_vm1, %v5827_v59 }
  0xc7   : > { %5128 = vmatprep.mubr.msk.f32.mxu1 %vm307_vm1, %v7254_v24 }
  0xc9   : > { %5179 = vmatmul.mubr.msk.f32.gmra.mxu0 %vm307_vm1, %v5841_v61 }
  0xca   : > { %5129 = vmatmul.mubr.msk.f32.gmra.mxu1 %vm307_vm1, %v7255_v26  ;;  %5181 = vmatprep.mubr.msk.f32.mxu0 %vm307_vm1, %v5847_v63 }
  0xcb   : > { %5131 = vmatprep.mubr.msk.f32.mxu1 %vm307_vm1, %v7256_v28 }
  0xcd   : > { %5182 = vmatmul.mubr.msk.f32.gmra.mxu0 %vm307_vm1, %v5861_v1 }
  0xce   : > { %5132 = vmatmul.mubr.msk.f32.gmra.mxu1 %vm307_vm1, %v7257_v29  ;;  %5184 = vmatprep.mubr.msk.f32.mxu0 %vm307_vm1, %v5867_v3 }
  0xcf   : > { %5134 = vmatprep.mubr.msk.f32.mxu1 %vm307_vm1, %v7258_v30 }
  0xd1   : > { %5185 = vmatmul.mubr.msk.f32.gmra.mxu0 %vm307_vm1, %v5881_v9 }
  0xd2   : > { %5135 = vmatmul.mubr.msk.f32.gmra.mxu1 %vm307_vm1, %v7259_v31  ;;  %5187 = vmatprep.mubr.msk.f32.mxu0 %vm307_vm1, %v5887_v37 }
  0xd3   : > { %5137 = vmatprep.mubr.msk.f32.mxu1 %vm307_vm1, %v7260_v32 }
  0xd5   : > { %5188 = vmatmul.mubr.msk.f32.gmra.mxu0 %vm307_vm1, %v5901_v39 }
  0xd6   : > { %5138 = vmatmul.mubr.msk.f32.gmra.mxu1 %vm307_vm1, %v7261_v33  ;;  %5190 = vmatprep.mubr.msk.f32.mxu0 %vm307_vm1, %v5907_v5  ;;  %v7271_v5 = vld [vmem:[#allocation29_spill] sm:$0xff] }
  0xd7   : > { %5140 = vmatprep.mubr.msk.f32.mxu1 %vm307_vm1, %v7262_v34 }
  0xd9   : > { %5191 = vmatmul.mubr.msk.f32.gmra.mxu0 %vm307_vm1, %v5921_v38  ;;  %v7274_v38 = vld [vmem:[#allocation31_spill] sm:$0xff] }
  0xda   : > { %5141 = vmatmul.mubr.msk.f32.gmra.mxu1 %vm307_vm1, %v7263_v35  ;;  %5193 = vmatprep.mubr.msk.f32.mxu0 %vm307_vm1, %v5927_v0  ;;  %v7269_v0 = vld [vmem:[#allocation27_spill] sm:$0xff] }
  0xdb   : > { %5143 = vmatprep.mubr.msk.f32.mxu1 %vm307_vm1, %v7264_v36 }
  0xdd   : > { %v6280_v41 = vpop.f32.mrf.mxu0  ;;  %5194 = vmatmul.mubr.msk.f32.gmra.mxu0 %vm307_vm1, %v5941_v2 }
  0xde   : > { %v6282_v43 = vpop.f32.mrf.mxu1  ;;  %5144 = vmatmul.mubr.msk.f32.gmra.mxu1 %vm307_vm1, %v7265_v44  ;;  %5196 = vmatprep.mubr.msk.f32.mxu0 %vm307_vm1, %v5947_v60 }
  0xdf   : > { %5146 = vmatprep.mubr.msk.f32.mxu1 %vm307_vm1, %v7266_v45  ;;  %v6292_v47 = vpop.f32.mrf.mxu0 }
  0xe0   : > { %v6294_v49 = vpop.f32.mrf.mxu1 }
  0xe1   : > { %v6296_v51 = vpop.f32.mrf.mxu0  ;;  %5197 = vmatmul.mubr.msk.f32.gmra.mxu0 %vm307_vm1, %v5961_v62  ;;  %v7270_v62 = vld [vmem:[#allocation28_spill] sm:$0xff] }
  0xe2   : > { %v6298_v53 = vpop.f32.mrf.mxu1  ;;  %5147 = vmatmul.mubr.msk.f32.gmra.mxu1 %vm307_vm1, %v7267_v55  ;;  %5199 = vmatprep.mubr.msk.f32.mxu0 %vm307_vm1, %v5967_v56 }
  0xe3   : > { %5149 = vmatprep.mubr.msk.f32.mxu1 %vm307_vm1, %v7268_v57  ;;  %v6308_v59 = vpop.f32.mrf.mxu0 }
  0xe4   : > { %v6310_v60 = vpop.f32.mrf.mxu1 }
  0xe5   : > { %v6312_v61 = vpop.f32.mrf.mxu0  ;;  %5200 = vmatmul.mubr.msk.f32.gmra.mxu0 %vm307_vm1, %v5981_v58  ;;  %v7272_v58 = vld [vmem:[#allocation30_spill] sm:$0xff] }
  0xe6   : > { %v6314_v63 = vpop.f32.mrf.mxu1  ;;  %5150 = vmatmul.mubr.msk.f32.gmra.mxu1 %vm307_vm1, %v7269_v0  ;;  %5202 = vmatprep.mubr.msk.f32.mxu0 %vm307_vm1, %v5987_v52 }
  0xe7   : > { %5152 = vmatprep.mubr.msk.f32.mxu1 %vm307_vm1, %v7270_v62  ;;  %v6324_v56 = vpop.f32.mrf.mxu0 }
  0xe8   : > { %v6326_v1 = vpop.f32.mrf.mxu1 }
  0xe9   : > { %v6328_v2 = vpop.f32.mrf.mxu0  ;;  %5203 = vmatmul.mubr.msk.f32.gmra.mxu0 %vm307_vm1, %v6001_v54  ;;  %v7275_v54 = vld [vmem:[#allocation32_spill] sm:$0xff] }
  0xea   : > { %v6330_v3 = vpop.f32.mrf.mxu1  ;;  %5153 = vmatmul.mubr.msk.f32.gmra.mxu1 %vm307_vm1, %v7271_v5  ;;  %5205 = vmatprep.mubr.msk.f32.mxu0 %vm307_vm1, %v6007_v48 }
  0xeb   : > { %5155 = vmatprep.mubr.msk.f32.mxu1 %vm307_vm1, %v7272_v58  ;;  %v6340_v52 = vpop.f32.mrf.mxu0 }
  0xec   : > { %v6342_v9 = vpop.f32.mrf.mxu1 }
  0xed   : > { %v6344_v10 = vpop.f32.mrf.mxu0  ;;  %5206 = vmatmul.mubr.msk.f32.gmra.mxu0 %vm307_vm1, %v6021_v50  ;;  %v7278_v50 = vld [vmem:[#allocation34_spill] sm:$0xff] }
  0xee   : > { %v6346_v37 = vpop.f32.mrf.mxu1  ;;  %5156 = vmatmul.mubr.msk.f32.gmra.mxu1 %vm307_vm1, %v7274_v38  ;;  %5208 = vmatprep.mubr.msk.f32.mxu0 %vm307_vm1, %v6027_v42 }
  0xef   : > { %7273 = vst [vmem:[#allocation6_spill] sm:$0xff] %v6346_v37  ;;  %5158 = vmatprep.mubr.msk.f32.mxu1 %vm307_vm1, %v7275_v54  ;;  %v6356_v48 = vpop.f32.mrf.mxu0  ;;  %v7282_v37 = vld [vmem:[#allocation35_spill] sm:$0xff] }
  0xf0   : > { %v6358_v39 = vpop.f32.mrf.mxu1 }
  0xf1   : > { %7276 = vst [vmem:[#allocation7_spill] sm:$0xff] %v6358_v39  ;;  %v6360_v7 = vpop.f32.mrf.mxu0  ;;  %5209 = vmatmul.mubr.msk.f32.gmra.mxu0 %vm307_vm1, %v6041_v46  ;;  %v6392_v46 = vld [vmem:[%s5552_s9 + $0x18a] sm:$0xff] }
  0xf2   : > { %v6362_v12 = vpop.f32.mrf.mxu1  ;;  %5159 = vmatmul.mubr.msk.f32.gmra.mxu1 %vm307_vm1, %v6024_v40  ;;  %5211 = vmatprep.mubr.msk.f32.mxu0 %vm307_vm1, %v6185_v4  ;;  %7283 = vst [vmem:[#allocation12_spill] sm:$0xff] %v6392_v46  ;;  %v4398_v4 = vld [vmem:[%s5552_s9 + $0x1a0] sm:$0xff] }
  0xf3   : > { %7277 = vst [vmem:[#allocation8_spill] sm:$0xff] %v6362_v12  ;;  %5161 = vmatprep.mubr.msk.f32.mxu1 %vm307_vm1, %v7278_v50  ;;  %v6372_v42 = vpop.f32.mrf.mxu0 }
  0xf4   : > { %v6374_v14 = vpop.f32.mrf.mxu1 }
  0xf5   : > { %7279 = vst [vmem:[#allocation9_spill] sm:$0xff] %v6374_v14  ;;  %v6380_v12 = vpop.f32.mrf.mxu0  ;;  %5212 = vmatmul.mubr.msk.f32.gmra.mxu0 %vm307_vm1, %v6199_v8 }
  0xf6   : > { %v6382_v39 = vpop.f32.mrf.mxu1  ;;  %5162 = vmatmul.mubr.msk.f32.gmra.mxu1 %vm307_vm1, %v7282_v37  ;;  %5214 = vmatprep.mubr.msk.f32.mxu0 %vm307_vm1, %v4397_v6 }
  0xf7   : > { %7281 = vst [vmem:[#allocation11_spill] sm:$0xff] %v6382_v39  ;;  %5164 = vmatprep.mubr.msk.f32.mxu1 %vm307_vm1, %v6377_v11  ;;  %v6395_v50 = vpop.f32.mrf.mxu0 }
  0xf8   : > { %v6397_v14 = vpop.f32.mrf.mxu1 }
  0xf9   : > { %7284 = vst [vmem:[#allocation13_spill] sm:$0xff] %v6397_v14  ;;  %v6399_v40 = vpop.f32.mrf.mxu0  ;;  %5215 = vmatmul.mubr.msk.f32.gmra.mxu0 %vm307_vm1, %v4398_v4 }
  0xfa   : > { %v6401_v39 = vpop.f32.mrf.mxu1  ;;  %5165 = vmatmul.mubr.msk.f32.gmra.mxu1 %vm307_vm1, %v6392_v46  ;;  %5269 = vmatprep.mubr.msk.f32.mxu0 %vm307_vm1, %v7250_v16 }
  0xfb   : > { %7285 = vst [vmem:[#allocation14_spill] sm:$0xff] %v6401_v39  ;;  %5219 = vmatprep.mubr.msk.f32.mxu1 %vm307_vm1, %v5597_v13  ;;  %v6410_v6 = vpop.f32.mrf.mxu0 }
  0xfc   : > { %v6412_v8 = vpop.f32.mrf.mxu1 }
  0xfd   : > { %7286 = vst [vmem:[#allocation15_spill] sm:$0xff] %v6412_v8  ;;  %v4971_v14 = vpop.f32.mrf.mxu0  ;;  %5270 = vmatmul.mubr.msk.f32.vlgmr.msra.gmra.mxu0 %vm307_vm1, %v7251_v18 }
  0xfe   : > { %v4921_v37 = vpop.f32.mrf.mxu1  ;;  %5220 = vmatmul.mubr.msk.f32.vlgmr.msra.gmra.mxu1 %vm307_vm1, %v5615_v15  ;;  %5272 = vmatprep.mubr.msk.f32.mxu0 %vm307_vm1, %v7252_v20 }
  0xff   : > { %v804_v4 = vadd.f32 %v4921_v37, %v6280_v41  ;;  %5222 = vmatprep.mubr.msk.f32.mxu1 %vm307_vm1, %v5621_v17  ;;  %v1156_v16 = vpop.f32.mrf.mxu0  ;;  %v4443_v37 = vld [vmem:[%s5552_s9 + $0xa9] sm:$0xff] }
 0x100   : > { %v798_v13 = vpop.f32.mrf.mxu1 }
 0x101   : > { %v6423_v39 = vadd.f32 %v4971_v14, %v804_v4  ;;  %v799_v8 = vadd.f32 %v798_v13, %v6292_v47  ;;  %v4974_v11 = vpop.f32.mrf.mxu0  ;;  %5273 = vmatmul.mubr.msk.f32.gmra.mxu0 %vm307_vm1, %v7253_v22 }
 0x102   : > { %v4924_v46 = vpop.f32.mrf.mxu1  ;;  %5223 = vmatmul.mubr.msk.f32.gmra.mxu1 %vm307_vm1, %v5635_v19  ;;  %5275 = vmatprep.mubr.msk.f32.mxu0 %vm307_vm1, %v7254_v24 }
 0x103   : > { %v6430_v15 = vadd.f32 %v1156_v16, %v799_v8  ;;  %v814_v17 = vadd.f32 %v4924_v46, %v6296_v51  ;;  %5225 = vmatprep.mubr.msk.f32.mxu1 %vm307_vm1, %v5641_v21  ;;  %v1166_v20 = vpop.f32.mrf.mxu0  ;;  %v4441_v51 = vld [vmem:[%s5552_s9 + $0x91] sm:$0xff] }
 0x104   : > { %v808_v18 = vpop.f32.mrf.mxu1  ;;  %v4444_v16 = vld [vmem:[%s5552_s9 + $0xb1] sm:$0xff] }
 0x105   : > { %v6437_v41 = vadd.f32 %v4974_v11, %v814_v17  ;;  %v809_v19 = vadd.f32 %v808_v18, %v6308_v59  ;;  %v4977_v14 = vpop.f32.mrf.mxu0  ;;  %5276 = vmatmul.mubr.msk.f32.gmra.mxu0 %vm307_vm1, %v7255_v26  ;;  %v4445_v18 = vld [vmem:[%s5552_s9 + $0xc1] sm:$0xff] }
 0x106   : > { %v4927_v47 = vpop.f32.mrf.mxu1  ;;  %5226 = vmatmul.mubr.msk.f32.gmra.mxu1 %vm307_vm1, %v5655_v23  ;;  %5278 = vmatprep.mubr.msk.f32.mxu0 %vm307_vm1, %v7256_v28 }
 0x107   : > { %v6444_v22 = vadd.f32 %v1166_v20, %v809_v19  ;;  %v824_v21 = vadd.f32 %v4927_v47, %v6312_v61  ;;  %5228 = vmatprep.mubr.msk.f32.mxu1 %vm307_vm1, %v5661_v25  ;;  %v1176_v24 = vpop.f32.mrf.mxu0  ;;  %v4442_v61 = vld [vmem:[%s5552_s9 + $0x99] sm:$0xff] }
 0x108   : > { %v818_v11 = vpop.f32.mrf.mxu1 }
 0x109   : > { %v6452_v59 = vadd.f32 %v4977_v14, %v824_v21  ;;  %v819_v23 = vadd.f32 %v818_v11, %v6324_v56  ;;  %v4980_v46 = vpop.f32.mrf.mxu0  ;;  %5279 = vmatmul.mubr.msk.f32.gmra.mxu0 %vm307_vm1, %v7257_v29  ;;  %v4446_v14 = vld [vmem:[%s5552_s9 + $0xc9] sm:$0xff]  ;;  %v4447_v11 = vld [vmem:[%s5552_s9 + $0xd9] sm:$0xff] }
 0x10a   : > { %v4930_v26 = vpop.f32.mrf.mxu1  ;;  %5229 = vmatmul.mubr.msk.f32.gmra.mxu1 %vm307_vm1, %v5675_v27  ;;  %5281 = vmatprep.mubr.msk.f32.mxu0 %vm307_vm1, %v7258_v30 }
 0x10b   : > { %v6459_v25 = vadd.f32 %v1176_v24, %v819_v23  ;;  %v834_v28 = vadd.f32 %v4930_v26, %v6328_v2  ;;  %5231 = vmatprep.mubr.msk.f32.mxu1 %vm307_vm1, %v4441_v51  ;;  %v1186_v8 = vpop.f32.mrf.mxu0  ;;  %v4448_v26 = vld [vmem:[%s5552_s9 + $0xe1] sm:$0xff] }
 0x10c   : > { %v828_v56 = vpop.f32.mrf.mxu1 }
 0x10d   : > { %v6467_v4 = vadd.f32 %v4980_v46, %v834_v28  ;;  %v829_v27 = vadd.f32 %v828_v56, %v6340_v52  ;;  %v4983_v13 = vpop.f32.mrf.mxu0  ;;  %5282 = vmatmul.mubr.msk.f32.gmra.mxu0 %vm307_vm1, %v7259_v31  ;;  %v4449_v28 = vld [vmem:[%s5552_s9 + $0xf1] sm:$0xff] }
 0x10e   : > { %v4933_v29 = vpop.f32.mrf.mxu1  ;;  %5232 = vmatmul.mubr.msk.f32.gmra.mxu1 %vm307_vm1, %v4442_v61  ;;  %5284 = vmatprep.mubr.msk.f32.mxu0 %vm307_vm1, %v7260_v32 }
 0x10f   : > { %v6473_v2 = vadd.f32 %v1186_v8, %v829_v27  ;;  %v844_v30 = vadd.f32 %v4933_v29, %v6344_v10  ;;  %5234 = vmatprep.mubr.msk.f32.mxu1 %vm307_vm1, %v4443_v37  ;;  %v1196_v52 = vpop.f32.mrf.mxu0  ;;  %v4450_v37 = vld [vmem:[%s5552_s9 + $0xf9] sm:$0xff]  ;;  %v4451_v29 = vld [vmem:[%s5552_s9 + $0x109] sm:$0xff] }
 0x110   : > { %v838_v17 = vpop.f32.mrf.mxu1 }
 0x111   : > { %v6481_v20 = vadd.f32 %v4983_v13, %v844_v30  ;;  %v839_v19 = vadd.f32 %v838_v17, %v6356_v48  ;;  %v4986_v47 = vpop.f32.mrf.mxu0  ;;  %5285 = vmatmul.mubr.msk.f32.gmra.mxu0 %vm307_vm1, %v7261_v33  ;;  %v4452_v17 = vld [vmem:[%s5552_s9 + $0x111] sm:$0xff] }
 0x112   : > { %v4936_v31 = vpop.f32.mrf.mxu1  ;;  %5235 = vmatmul.mubr.msk.f32.gmra.mxu1 %vm307_vm1, %v4444_v16  ;;  %5287 = vmatprep.mubr.msk.f32.mxu0 %vm307_vm1, %v7262_v34 }
 0x113   : > { %v6487_v10 = vadd.f32 %v1196_v52, %v839_v19  ;;  %v854_v32 = vadd.f32 %v4936_v31, %v6360_v7  ;;  %5237 = vmatprep.mubr.msk.f32.mxu1 %vm307_vm1, %v4445_v18  ;;  %v1206_v48 = vpop.f32.mrf.mxu0  ;;  %v4453_v18 = vld [vmem:[%s5552_s9 + $0x121] sm:$0xff] }
 0x114   : > { %v848_v21 = vpop.f32.mrf.mxu1 }
 0x115   : > { %v6495_v24 = vadd.f32 %v4986_v47, %v854_v32  ;;  %v849_v51 = vadd.f32 %v848_v21, %v6372_v42  ;;  %v4989_v23 = vpop.f32.mrf.mxu0  ;;  %5288 = vmatmul.mubr.msk.f32.gmra.mxu0 %vm307_vm1, %v7263_v35  ;;  %v4454_v32 = vld [vmem:[%s5552_s9 + $0x129] sm:$0xff]  ;;  %v4455_v21 = vld [vmem:[%s5552_s9 + $0x139] sm:$0xff] }
 0x116   : > { %v4939_v33 = vpop.f32.mrf.mxu1  ;;  %5238 = vmatmul.mubr.msk.f32.gmra.mxu1 %vm307_vm1, %v4446_v14  ;;  %5290 = vmatprep.mubr.msk.f32.mxu0 %vm307_vm1, %v7264_v36 }
 0x117   : > { %v6501_v7 = vadd.f32 %v1206_v48, %v849_v51  ;;  %v864_v34 = vadd.f32 %v4939_v33, %v6380_v12  ;;  %5240 = vmatprep.mubr.msk.f32.mxu1 %vm307_vm1, %v4447_v11  ;;  %v1216_v42 = vpop.f32.mrf.mxu0  ;;  %v4456_v33 = vld [vmem:[%s5552_s9 + $0x141] sm:$0xff] }
 0x118   : > { %v858_v46 = vpop.f32.mrf.mxu1 }
 0x119   : > { %v6509_v61 = vadd.f32 %v4989_v23, %v864_v34  ;;  %v859_v56 = vadd.f32 %v858_v46, %v6395_v50  ;;  %v4992_v8 = vpop.f32.mrf.mxu0  ;;  %5291 = vmatmul.mubr.msk.f32.gmra.mxu0 %vm307_vm1, %v7265_v44  ;;  %v4457_v34 = vld [vmem:[%s5552_s9 + $0x151] sm:$0xff] }
 0x11a   : > { %v4942_v35 = vpop.f32.mrf.mxu1  ;;  %5241 = vmatmul.mubr.msk.f32.gmra.mxu1 %vm307_vm1, %v4448_v26  ;;  %5293 = vmatprep.mubr.msk.f32.mxu0 %vm307_vm1, %v7266_v45 }
 0x11b   : > { %v6515_v12 = vadd.f32 %v1216_v42, %v859_v56  ;;  %v874_v36 = vadd.f32 %v4942_v35, %v6399_v40  ;;  %5243 = vmatprep.mubr.msk.f32.mxu1 %vm307_vm1, %v4449_v28  ;;  %v1226_v50 = vpop.f32.mrf.mxu0  ;;  %v4458_v28 = vld [vmem:[%s5552_s9 + $0x159] sm:$0xff]  ;;  %v4459_v35 = vld [vmem:[%s5552_s9 + $0x169] sm:$0xff] }
 0x11c   : > { %v868_v27 = vpop.f32.mrf.mxu1 }
 0x11d   : > { %v6523_v13 = vadd.f32 %v4992_v8, %v874_v36  ;;  %v869_v30 = vadd.f32 %v868_v27, %v6410_v6  ;;  %v4995_v16 = vpop.f32.mrf.mxu0  ;;  %5294 = vmatmul.mubr.msk.f32.gmra.mxu0 %vm307_vm1, %v7267_v55  ;;  %v4525_v8 = vld [vmem:[%s5552_s9 + $0x16a] sm:$0xff] }
 0x11e   : > { %v4945_v44 = vpop.f32.mrf.mxu1  ;;  %5244 = vmatmul.mubr.msk.f32.gmra.mxu1 %vm307_vm1, %v4450_v37  ;;  %5296 = vmatprep.mubr.msk.f32.mxu0 %vm307_vm1, %v7268_v57 }
 0x11f   : > { %v6529_v40 = vadd.f32 %v1226_v50, %v869_v30  ;;  %v884_v45 = vadd.f32 %v4945_v44, %v6282_v43  ;;  %5246 = vmatprep.mubr.msk.f32.mxu1 %vm307_vm1, %v4451_v29  ;;  %v1236_v6 = vpop.f32.mrf.mxu0  ;;  %v4460_v30 = vld [vmem:[%s5552_s9 + $0x171] sm:$0xff] }
 0x120   : > { %v878_v52 = vpop.f32.mrf.mxu1  ;;  %v4526_v44 = vld [vmem:[%s5552_s9 + $0x172] sm:$0xff] }
 0x121   : > { %v6537_v19 = vadd.f32 %v4995_v16, %v884_v45  ;;  %v879_v31 = vadd.f32 %v878_v52, %v6294_v49  ;;  %v4998_v47 = vpop.f32.mrf.mxu0  ;;  %5297 = vmatmul.mubr.msk.f32.gmra.mxu0 %vm307_vm1, %v7269_v0 }
 0x122   : > { %v4948_v55 = vpop.f32.mrf.mxu1  ;;  %5247 = vmatmul.mubr.msk.f32.gmra.mxu1 %vm307_vm1, %v4452_v17  ;;  %5299 = vmatprep.mubr.msk.f32.mxu0 %vm307_vm1, %v7270_v62  ;;  %v7289_v17 = vld [vmem:[#allocation7_spill] sm:$0xff] }
 0x123   : > { %v6543_v43 = vadd.f32 %v1236_v6, %v879_v31  ;;  %v894_v57 = vadd.f32 %v4948_v55, %v6298_v53  ;;  %5249 = vmatprep.mubr.msk.f32.mxu1 %vm307_vm1, %v4453_v18  ;;  %v1246_v49 = vpop.f32.mrf.mxu0  ;;  %v7290_v55 = vld [vmem:[#allocation8_spill] sm:$0xff] }
 0x124   : > { %v888_v14 = vpop.f32.mrf.mxu1 }
 0x125   : > { %v6551_v48 = vadd.f32 %v4998_v47, %v894_v57  ;;  %v889_v11 = vadd.f32 %v888_v14, %v6310_v60  ;;  %v5001_v51 = vpop.f32.mrf.mxu0  ;;  %5300 = vmatmul.mubr.msk.f32.gmra.mxu0 %vm307_vm1, %v7271_v5  ;;  %v7291_v57 = vld [vmem:[#allocation36_spill] sm:$0xff] }
 0x126   : > { %v4951_v0 = vpop.f32.mrf.mxu1  ;;  %5250 = vmatmul.mubr.msk.f32.gmra.mxu1 %vm307_vm1, %v4454_v32  ;;  %5302 = vmatprep.mubr.msk.f32.mxu0 %vm307_vm1, %v7272_v58  ;;  %v7292_v32 = vld [vmem:[#allocation10_spill] sm:$0xff] }
 0x127   : > { %v6557_v53 = vadd.f32 %v1246_v49, %v889_v11  ;;  %v904_v62 = vadd.f32 %v4951_v0, %v6314_v63  ;;  %5252 = vmatprep.mubr.msk.f32.mxu1 %vm307_vm1, %v4455_v21  ;;  %v1256_v60 = vpop.f32.mrf.mxu0  ;;  %v4463_v21 = vld [vmem:[%s5552_s9 + $0x199] sm:$0xff] }
 0x128   : > { %v898_v23 = vpop.f32.mrf.mxu1  ;;  %v4529_v11 = vld [vmem:[%s5552_s9 + $0x19a] sm:$0xff] }
 0x129   : > { %v6565_v26 = vadd.f32 %v5001_v51, %v904_v62  ;;  %v899_v5 = vadd.f32 %v898_v23, %v6326_v1  ;;  %v5004_v42 = vpop.f32.mrf.mxu0  ;;  %5303 = vmatmul.mubr.msk.f32.gmra.mxu0 %vm307_vm1, %v7274_v38  ;;  %v7293_v51 = vld [vmem:[#allocation9_spill] sm:$0xff] }
 0x12a   : > { %v4954_v46 = vpop.f32.mrf.mxu1  ;;  %5253 = vmatmul.mubr.msk.f32.gmra.mxu1 %vm307_vm1, %v4456_v33  ;;  %5305 = vmatprep.mubr.msk.f32.mxu0 %vm307_vm1, %v7275_v54  ;;  %v7288_v54 = vld [vmem:[#allocation6_spill] sm:$0xff] }
 0x12b   : > { %v6571_v63 = vadd.f32 %v1256_v60, %v899_v5  ;;  %v914_v58 = vadd.f32 %v4954_v46, %v6330_v3  ;;  %5255 = vmatprep.mubr.msk.f32.mxu1 %vm307_vm1, %v4457_v34  ;;  %v1266_v56 = vpop.f32.mrf.mxu0  ;;  %v7287_v3 = vld [vmem:[#allocation33_spill] sm:$0xff]  ;;  %v7295_v34 = vld [vmem:[#allocation12_spill] sm:$0xff]  ;;  %v7296_v46 = vld [vmem:[#allocation11_spill] sm:$0xff] }
 0x12c   : > { %v908_v1 = vpop.f32.mrf.mxu1  ;;  %v7294_v60 = vld [vmem:[#allocation5_spill] sm:$0xff] }
 0x12d   : > { %v6580_v36 = vadd.f32 %v5004_v42, %v914_v58  ;;  %v909_v38 = vadd.f32 %v908_v1, %v6342_v9  ;;  %v5007_v27 = vpop.f32.mrf.mxu0  ;;  %5306 = vmatmul.mubr.msk.f32.gmra.mxu0 %vm307_vm1, %v7287_v3  ;;  %v4464_v58 = vld [vmem:[%s5552_s9 + $0x1a1] sm:$0xff] }
 0x12e   : > { %v4957_v37 = vpop.f32.mrf.mxu1  ;;  %5256 = vmatmul.mubr.msk.f32.gmra.mxu1 %vm307_vm1, %v4458_v28  ;;  %5308 = vmatprep.mubr.msk.f32.mxu0 %vm307_vm1, %v4525_v8  ;;  %v4530_v28 = vld [vmem:[%s5552_s9 + $0x1a2] sm:$0xff]  ;;  %s214_s9 = sand.u32 1, %s5435_s13  }
 0x12f   : > { %v6586_v50 = vadd.f32 %v1266_v56, %v909_v38  ;;  %v924_v29 = vadd.f32 %v4957_v37, %v7288_v54  ;;  %5258 = vmatprep.mubr.msk.f32.mxu1 %vm307_vm1, %v4459_v35  ;;  %v1276_v16 = vpop.f32.mrf.mxu0  ;;  %v7297_v8 = vld [vmem:[#allocation13_spill] sm:$0xff]  ;;  %v7298_v54 = vld [vmem:[#allocation14_spill] sm:$0xff]  ;;  %s4064_s10 = sshll.u32 %s214_s9, 1  ;;  %s3906_s27 = scalar_lea.sflag [#allocation3], %s214_s9 }
 0x130   : > { %v918_v9 = vpop.f32.mrf.mxu1  ;;  %s216_s18 = scalar_lea.vmem [#allocation2], %s4064_s10 }
 0x131   : > { %v6593_v45 = vadd.f32 %v5007_v27, %v924_v29  ;;  %v919_v52 = vadd.f32 %v918_v9, %v7289_v17  ;;  %v5010_v18 = vpop.f32.mrf.mxu0  ;;  %5309 = vmatmul.mubr.msk.f32.gmra.mxu0 %vm307_vm1, %v4526_v44  ;;  %s3924_s19 = sshll.u32 %s216_s18, 4  ;;  %s3925_s19 = int_to_ptr.vmem [resolvable:$true] %s3924_s19 }
 0x132   : > { %v4960_v6 = vpop.f32.mrf.mxu1  ;;  %5259 = vmatmul.mubr.msk.f32.gmra.mxu1 %vm307_vm1, %v4460_v30  ;;  %5311 = vmatprep.mubr.msk.f32.mxu0 %vm307_vm1, %v7292_v32  ;;  %s5375_s28 = scalar_lea.vmem %s3925_s19, 32  ;;  %p5382_p1 = scmp.lt.s32.totalorder %s3925_s19, %s5380_s29 }
 0x133   : > { %v6598_v31 = vadd.f32 %v1276_v16, %v919_v52  ;;  %v934_v47 = vadd.f32 %v4960_v6, %v7290_v55  ;;  %5261 = vmatprep.mubr.msk.f32.mxu1 %vm307_vm1, %v7291_v57  ;;  %v1286_v49 = vpop.f32.mrf.mxu0  ;;  %v7299_v16 = vld [vmem:[#allocation15_spill] sm:$0xff]  ;;  %p5376_p12 = scmp.ne.s32.totalorder %s3925_s19, %s5375_s28  ;;  %p5383_p2 = scmp.lt.s32.totalorder %s5381_s30, %s5375_s28 }
 0x134   : > { %v928_v14 = vpop.f32.mrf.mxu1 }
 0x135   : > { %v6607_v0 = vadd.f32 %v5010_v18, %v934_v47  ;;  %v929_v62 = vadd.f32 %v928_v14, %v7293_v51  ;;  %v5013_v23 = vpop.f32.mrf.mxu0  ;;  %5312 = vmatmul.mubr.msk.f32.gmra.mxu0 %vm307_vm1, %v7295_v34  ;;  %p5377_p13 = pnand %p5376_p12, %p5514_p4  ;;  %p5384_p3 = por %p5383_p2, %p5382_p1 }
 0x136   : > { %v4963_v33 = vpop.f32.mrf.mxu1  ;;  %5262 = vmatmul.mubr.msk.f32.gmra.mxu1 %vm307_vm1, %v7294_v60  ;;  %5314 = vmatprep.mubr.msk.f32.mxu0 %vm307_vm1, %v4529_v11 }
 0x137   : > { %v6614_v5 = vadd.f32 %v1286_v49, %v929_v62  ;;  %v944_v42 = vadd.f32 %v4963_v33, %v7296_v46  ;;  %5264 = vmatprep.mubr.msk.f32.mxu1 %vm307_vm1, %v4463_v21  ;;  %v1296_v56 = vpop.f32.mrf.mxu0  ;;  %p5378_p0 = pneg %p5377_p13 }
 0x138   : > { %v938_v1 = vpop.f32.mrf.mxu1 }
 0x139   : > { %v6621_v35 = vadd.f32 %v5013_v23, %v944_v42  ;;  %v939_v38 = vadd.f32 %v938_v1, %v7297_v8  ;;  %v5016_v27 = vpop.f32.mrf.mxu0  ;;  %5315 = vmatmul.mubr.msk.f32.gmra.mxu0 %vm307_vm1, %v4530_v28  ;;  %p5385_p5 = pnand %p5384_p3, %p5378_p0 }
 0x13a   : > { %v4966_v37 = vpop.f32.mrf.mxu1  ;;  %5265 = vmatmul.mubr.msk.f32.gmra.mxu1 %vm307_vm1, %v4464_v58 }
 0x13b   : > { %v6626_v3 = vadd.f32 %v1296_v56, %v939_v38  ;;  %v954_v29 = vadd.f32 %v4966_v37, %v7298_v54  ;;  %v1306_v44 = vpop.f32.mrf.mxu0 }
 0x13c   : > { %v948_v30 = vpop.f32.mrf.mxu1 }
 0x13d   : > { %v6629_v9 = vadd.f32 %v5016_v27, %v954_v29  ;;  %v949_v17 = vadd.f32 %v948_v30, %v7299_v16  ;;  %v5071_v6 = vpop.f32.mrf.mxu0 }
 0x13e   : > { %v5021_v52 = vpop.f32.mrf.mxu1 }
 0x13f   : > { %v6632_v18 = vadd.f32 %v1306_v44, %v949_v17  ;;  %v1707_v55 = vadd.f32 %v5021_v52, %v6423_v39  ;;  %v1937_v57 = vpop.f32.mrf.mxu0 }
 0x140   : > { %v1547_v47 = vpop.f32.mrf.mxu1 }
 0x141   : > { %v6635_v32 = vadd.f32 %v5071_v6, %v1707_v55  ;;  %v1706_v14 = vadd.f32 %v1547_v47, %v6430_v15  ;;  %v5074_v21 = vpop.f32.mrf.mxu0 }
 0x142   : > { %v5024_v49 = vpop.f32.mrf.mxu1 }
 0x143   : > { %v6638_v11 = vadd.f32 %v1937_v57, %v1706_v14  ;;  %v1709_v51 = vadd.f32 %v5024_v49, %v6437_v41  ;;  %v1947_v33 = vpop.f32.mrf.mxu0 }
 0x144   : > { %v1557_v62 = vpop.f32.mrf.mxu1 }
 0x145   : > { %v6641_v23 = vadd.f32 %v5074_v21, %v1709_v51  ;;  %v1708_v60 = vadd.f32 %v1557_v62, %v6444_v22  ;;  %v5077_v39 = vpop.f32.mrf.mxu0 }
 0x146   : > { %v5027_v34 = vpop.f32.mrf.mxu1 }
 0x147   : > { %v6644_v46 = vadd.f32 %v1947_v33, %v1708_v60  ;;  %v1711_v42 = vadd.f32 %v5027_v34, %v6452_v59  ;;  %v1957_v15 = vpop.f32.mrf.mxu0 }
 0x148   : > { %v1567_v58 = vpop.f32.mrf.mxu1 }
 0x149   : > { %v6647_v28 = vadd.f32 %v5077_v39, %v1711_v42  ;;  %v1710_v1 = vadd.f32 %v1567_v58, %v6459_v25  ;;  %v5080_v41 = vpop.f32.mrf.mxu0 }
 0x14a   : > { %v5030_v56 = vpop.f32.mrf.mxu1 }
 0x14b   : > { %v6650_v8 = vadd.f32 %v1957_v15, %v1710_v1  ;;  %v1713_v38 = vadd.f32 %v5030_v56, %v6467_v4  ;;  %v1967_v22 = vpop.f32.mrf.mxu0 }
 0x14c   : > { %v1577_v37 = vpop.f32.mrf.mxu1 }
 0x14d   : > { %v6653_v27 = vadd.f32 %v5080_v41, %v1713_v38  ;;  %v1712_v54 = vadd.f32 %v1577_v37, %v6473_v2  ;;  %v5083_v59 = vpop.f32.mrf.mxu0 }
 0x14e   : > { %v5033_v29 = vpop.f32.mrf.mxu1 }
 0x14f   : > { %v6656_v30 = vadd.f32 %v1967_v22, %v1712_v54  ;;  %v1715_v44 = vadd.f32 %v5033_v29, %v6481_v20  ;;  %v1977_v25 = vpop.f32.mrf.mxu0 }
 0x150   : > { %v1587_v16 = vpop.f32.mrf.mxu1 }
 0x151   : > { %v6659_v17 = vadd.f32 %v5083_v59, %v1715_v44  ;;  %v1714_v52 = vadd.f32 %v1587_v16, %v6487_v10  ;;  %v5086_v4 = vpop.f32.mrf.mxu0 }
 0x152   : > { %v5036_v6 = vpop.f32.mrf.mxu1 }
 0x153   : > { %v6662_v55 = vadd.f32 %v1977_v25, %v1714_v52  ;;  %v1717_v47 = vadd.f32 %v5036_v6, %v6495_v24  ;;  %v1987_v2 = vpop.f32.mrf.mxu0 }
 0x154   : > { %v1597_v57 = vpop.f32.mrf.mxu1 }
 0x155   : > { %v6665_v14 = vadd.f32 %v5086_v4, %v1717_v47  ;;  %v1716_v49 = vadd.f32 %v1597_v57, %v6501_v7  ;;  %v5089_v20 = vpop.f32.mrf.mxu0 }
 0x156   : > { %v5039_v21 = vpop.f32.mrf.mxu1 }
 0x157   : > { %v6668_v51 = vadd.f32 %v1987_v2, %v1716_v49  ;;  %v1719_v62 = vadd.f32 %v5039_v21, %v6509_v61  ;;  %v1997_v10 = vpop.f32.mrf.mxu0 }
 0x158   : > { %v1607_v33 = vpop.f32.mrf.mxu1 }
 0x159   : > { %v6671_v60 = vadd.f32 %v5089_v20, %v1719_v62  ;;  %v1718_v34 = vadd.f32 %v1607_v33, %v6515_v12  ;;  %v5092_v24 = vpop.f32.mrf.mxu0 }
 0x15a   : > { %v5042_v39 = vpop.f32.mrf.mxu1 }
 0x15b   : > { %v6674_v42 = vadd.f32 %v1997_v10, %v1718_v34  ;;  %v1721_v58 = vadd.f32 %v5042_v39, %v6523_v13  ;;  %v2007_v7 = vpop.f32.mrf.mxu0 }
 0x15c   : > { %v1617_v15 = vpop.f32.mrf.mxu1 }
 0x15d   : > { %v6677_v1 = vadd.f32 %v5092_v24, %v1721_v58  ;;  %v1720_v56 = vadd.f32 %v1617_v15, %v6529_v40  ;;  %v5095_v61 = vpop.f32.mrf.mxu0 }
 0x15e   : > { %v5045_v41 = vpop.f32.mrf.mxu1 }
 0x15f   : > { %v6680_v38 = vadd.f32 %v2007_v7, %v1720_v56  ;;  %v1723_v37 = vadd.f32 %v5045_v41, %v6537_v19  ;;  %v2017_v12 = vpop.f32.mrf.mxu0 }
 0x160   : > { %v1627_v22 = vpop.f32.mrf.mxu1 }
 0x161   : > { %v6683_v54 = vadd.f32 %v5095_v61, %v1723_v37  ;;  %v1722_v29 = vadd.f32 %v1627_v22, %v6543_v43  ;;  %v5098_v13 = vpop.f32.mrf.mxu0 }
 0x162   : > { %v5048_v59 = vpop.f32.mrf.mxu1 }
 0x163   : > { %v6686_v44 = vadd.f32 %v2017_v12, %v1722_v29  ;;  %v1725_v16 = vadd.f32 %v5048_v59, %v6551_v48  ;;  %v2027_v40 = vpop.f32.mrf.mxu0 }
 0x164   : > { %v1637_v25 = vpop.f32.mrf.mxu1 }
 0x165   : > { %v6689_v52 = vadd.f32 %v5098_v13, %v1725_v16  ;;  %v1724_v6 = vadd.f32 %v1637_v25, %v6557_v53  ;;  %v5101_v19 = vpop.f32.mrf.mxu0 }
 0x166   : > { %v5051_v4 = vpop.f32.mrf.mxu1 }
 0x167   : > { %v6692_v47 = vadd.f32 %v2027_v40, %v1724_v6  ;;  %v1727_v57 = vadd.f32 %v5051_v4, %v6565_v26  ;;  %v2037_v43 = vpop.f32.mrf.mxu0 }
 0x168   : > { %v1647_v2 = vpop.f32.mrf.mxu1 }
 0x169   : > { %v6695_v49 = vadd.f32 %v5101_v19, %v1727_v57  ;;  %v1726_v21 = vadd.f32 %v1647_v2, %v6571_v63  ;;  %v5104_v48 = vpop.f32.mrf.mxu0 }
 0x16a   : > { %v5054_v20 = vpop.f32.mrf.mxu1 }
 0x16b   : > { %7300 = vst [vmem:[#allocation16_spill] sm:$0xff] %v6695_v49  ;;  %v6698_v62 = vadd.f32 %v2037_v43, %v1726_v21  ;;  %v1729_v33 = vadd.f32 %v5054_v20, %v6580_v36  ;;  %v2047_v53 = vpop.f32.mrf.mxu0 }
 0x16c   : > { %v1657_v10 = vpop.f32.mrf.mxu1 }
 0x16d   : > { %7301 = vst [vmem:[#allocation17_spill] sm:$0xff] %v6698_v62  ;;  %v6701_v34 = vadd.f32 %v5104_v48, %v1729_v33  ;;  %v1728_v39 = vadd.f32 %v1657_v10, %v6586_v50  ;;  %v5107_v26 = vpop.f32.mrf.mxu0 }
 0x16e   : > { %v5057_v24 = vpop.f32.mrf.mxu1 }
 0x16f   : > { %7302 = vst [vmem:[#allocation18_spill] sm:$0xff] %v6701_v34  ;;  %v6704_v58 = vadd.f32 %v2047_v53, %v1728_v39  ;;  %v1731_v15 = vadd.f32 %v5057_v24, %v6593_v45  ;;  %v2057_v63 = vpop.f32.mrf.mxu0 }
 0x170   : > { %v1667_v7 = vpop.f32.mrf.mxu1 }
 0x171   : > { %7303 = vst [vmem:[#allocation19_spill] sm:$0xff] %v6704_v58  ;;  %v6707_v56 = vadd.f32 %v5107_v26, %v1731_v15  ;;  %v1730_v41 = vadd.f32 %v1667_v7, %v6598_v31  ;;  %v5110_v36 = vpop.f32.mrf.mxu0 }
 0x172   : > { %v5060_v61 = vpop.f32.mrf.mxu1 }
 0x173   : > { %7304 = vst [vmem:[#allocation20_spill] sm:$0xff] %v6707_v56  ;;  %v6710_v37 = vadd.f32 %v2057_v63, %v1730_v41  ;;  %v1733_v22 = vadd.f32 %v5060_v61, %v6607_v0  ;;  %v2067_v50 = vpop.f32.mrf.mxu0 }
 0x174   : > { %v1677_v12 = vpop.f32.mrf.mxu1 }
 0x175   : > { %7305 = vst [vmem:[#allocation21_spill] sm:$0xff] %v6710_v37  ;;  %v6713_v29 = vadd.f32 %v5110_v36, %v1733_v22  ;;  %v1732_v59 = vadd.f32 %v1677_v12, %v6614_v5  ;;  %v5113_v45 = vpop.f32.mrf.mxu0 }
 0x176   : > { %v5063_v13 = vpop.f32.mrf.mxu1 }
 0x177   : > { %7306 = vst [vmem:[#allocation22_spill] sm:$0xff] %v6713_v29  ;;  %v6716_v16 = vadd.f32 %v2067_v50, %v1732_v59  ;;  %v1735_v25 = vadd.f32 %v5063_v13, %v6621_v35  ;;  %v2077_v31 = vpop.f32.mrf.mxu0 }
 0x178   : > { %v1687_v40 = vpop.f32.mrf.mxu1 }
 0x179   : > { %7307 = vst [vmem:[#allocation23_spill] sm:$0xff] %v6716_v16  ;;  %v6719_v6 = vadd.f32 %v5113_v45, %v1735_v25  ;;  %v1734_v4 = vadd.f32 %v1687_v40, %v6626_v3  ;;  %v5116_v0 = vpop.f32.mrf.mxu0 }
 0x17a   : > { %v5066_v19 = vpop.f32.mrf.mxu1 }
 0x17b   : > { %7308 = vst [vmem:[#allocation24_spill] sm:$0xff] %v6719_v6  ;;  %v6722_v57 = vadd.f32 %v2077_v31, %v1734_v4  ;;  %v1737_v2 = vadd.f32 %v5066_v19, %v6629_v9  ;;  %v2087_v5 = vpop.f32.mrf.mxu0 }
 0x17c   : > { %v1697_v43 = vpop.f32.mrf.mxu1 }
 0x17d   : > { %7309 = vst [vmem:[#allocation25_spill] sm:$0xff] %v6722_v57  ;;  %v6725_v21 = vadd.f32 %v5116_v0, %v1737_v2  ;;  %v1736_v20 = vadd.f32 %v1697_v43, %v6632_v18  ;;  %v6728_v35 = vpop.f32.mrf.mxu0 }
 0x17e   : > { %v5121_v48 = vpop.f32.mrf.mxu1 }
 0x17f   : > { %7310 = vst [vmem:[#allocation26_spill] sm:$0xff] %v6725_v21  ;;  %v6730_v33 = vadd.f32 %v2087_v5, %v1736_v20  ;;  %v6732_v53 = vpop.f32.mrf.mxu0 }
 0x180   : > { %v2327_v10 = vpop.f32.mrf.mxu1 }
 0x181   : > { %7311 = vst [vmem:[#allocation27_spill] sm:$0xff] %v6730_v33  ;;  %v6734_v39 = vpop.f32.mrf.mxu0 }
 0x182   : > { %v5124_v3 = vpop.f32.mrf.mxu1 }
 0x183   : > { %v6736_v26 = vpop.f32.mrf.mxu0 }
 0x184   : > { %v2337_v24 = vpop.f32.mrf.mxu1 }
 0x185   : > { %v6738_v15 = vpop.f32.mrf.mxu0 }
 0x186   : > { %v5127_v9 = vpop.f32.mrf.mxu1 }
 0x187   : > { %v6740_v63 = vpop.f32.mrf.mxu0 }
 0x188   : > { %v2347_v7 = vpop.f32.mrf.mxu1 }
 0x189   : > { %v6742_v41 = vpop.f32.mrf.mxu0 }
 0x18a   : > { %v5130_v18 = vpop.f32.mrf.mxu1 }
 0x18b   : > { %v6744_v36 = vpop.f32.mrf.mxu0 }
 0x18c   : > { %v2357_v61 = vpop.f32.mrf.mxu1 }
 0x18d   : > { %v6746_v12 = vpop.f32.mrf.mxu0 }
 0x18e   : > { %v5133_v22 = vpop.f32.mrf.mxu1 }
 0x18f   : > { %v6748_v59 = vpop.f32.mrf.mxu0 }
 0x190   : > { %v2367_v50 = vpop.f32.mrf.mxu1 }
 0x191   : > { %v6750_v45 = vpop.f32.mrf.mxu0 }
 0x192   : > { %v5136_v13 = vpop.f32.mrf.mxu1 }
 0x193   : > { %v6752_v40 = vpop.f32.mrf.mxu0 }
 0x194   : > { %v2377_v25 = vpop.f32.mrf.mxu1 }
 0x195   : > { %v6754_v4 = vpop.f32.mrf.mxu0 }
 0x196   : > { %v5139_v31 = vpop.f32.mrf.mxu1 }
 0x197   : > { %v6758_v0 = vpop.f32.mrf.mxu0 }
 0x198   : > { %v6756_v19 = vpop.f32.mrf.mxu1  ;;  %7312 = vst [vmem:[#allocation28_spill] sm:$0xff] %v6758_v0 }
 0x199   : > { %v6762_v43 = vpop.f32.mrf.mxu0 }
 0x19a   : > { %v6760_v2 = vpop.f32.mrf.mxu1  ;;  %7313 = vst [vmem:[#allocation29_spill] sm:$0xff] %v6762_v43 }
 0x19b   : > { %v6766_v20 = vpop.f32.mrf.mxu0 }
 0x19c   : > { %v6764_v5 = vpop.f32.mrf.mxu1  ;;  %7314 = vst [vmem:[#allocation30_spill] sm:$0xff] %v6766_v20 }
 0x19d   : > { %v6770_v21 = vpop.f32.mrf.mxu0 }
 0x19e   : > { %v6768_v33 = vpop.f32.mrf.mxu1  ;;  %7315 = vst [vmem:[#allocation31_spill] sm:$0xff] %v6770_v21 }
 0x19f   : > { %v6774_v6 = vpop.f32.mrf.mxu0 }
 0x1a0   : > { %v6772_v57 = vpop.f32.mrf.mxu1  ;;  %7316 = vst [vmem:[#allocation32_spill] sm:$0xff] %v6774_v6 }
 0x1a1   : > { %v6778_v29 = vpop.f32.mrf.mxu0 }
 0x1a2   : > { %v6776_v16 = vpop.f32.mrf.mxu1  ;;  %7317 = vst [vmem:[#allocation34_spill] sm:$0xff] %v6778_v29 }
 0x1a3   : > { %v6782_v56 = vpop.f32.mrf.mxu0 }
 0x1a4   : > { %v6780_v37 = vpop.f32.mrf.mxu1  ;;  %7318 = vst [vmem:[#allocation35_spill] sm:$0xff] %v6782_v56 }
 0x1a5   : > { %v6786_v34 = vpop.f32.mrf.mxu0 }
 0x1a6   : > { %v6784_v58 = vpop.f32.mrf.mxu1  ;;  %7320 = vst [vmem:[#allocation6_spill] sm:$0xff] %v6786_v34 }
 0x1a7   : > { %7319 = vst [vmem:[#allocation33_spill] sm:$0xff] %v6784_v58  ;;  %v6790_v49 = vpop.f32.mrf.mxu0 }
 0x1a8   : > { %v6788_v62 = vpop.f32.mrf.mxu1  ;;  %7322 = vst [vmem:[#allocation8_spill] sm:$0xff] %v6790_v49 }
 0x1a9   : > { %7321 = vst [vmem:[#allocation7_spill] sm:$0xff] %v6788_v62  ;;  %v6794_v20 = vpop.f32.mrf.mxu0 }
 0x1aa   : > { %v6792_v21 = vpop.f32.mrf.mxu1  ;;  %7324 = vst [vmem:[#allocation10_spill] sm:$0xff] %v6794_v20 }
 0x1ab   : > { %7323 = vst [vmem:[#allocation36_spill] sm:$0xff] %v6792_v21  ;;  %v6798_v43 = vpop.f32.mrf.mxu0 }
 0x1ac   : > { %v6796_v6 = vpop.f32.mrf.mxu1  ;;  %7326 = vst [vmem:[#allocation5_spill] sm:$0xff] %v6798_v43 }
 0x1ad   : > { %7325 = vst [vmem:[#allocation9_spill] sm:$0xff] %v6796_v6  ;;  %v6802_v0 = vpop.f32.mrf.mxu0 }
 0x1ae   : > { %v6800_v29 = vpop.f32.mrf.mxu1  ;;  %7328 = vst [vmem:[#allocation11_spill] sm:$0xff] %v6802_v0 }
 0x1af   : > { %7327 = vst [vmem:[#allocation12_spill] sm:$0xff] %v6800_v29  ;;  %v6806_v58 = vpop.f32.mrf.mxu0 }
 0x1b0   : > { %v6804_v56 = vpop.f32.mrf.mxu1  ;;  %7330 = vst [vmem:[#allocation14_spill] sm:$0xff] %v6806_v58 }
 0x1b1   : > { %7329 = vst [vmem:[#allocation13_spill] sm:$0xff] %v6804_v56  ;;  %v6810_v62 = vpop.f32.mrf.mxu0  ;;  %v2487_v56 = vadd.f32 %v5121_v48, %v6635_v32  ;;  %v2493_v48 = vadd.f32 %v5130_v18, %v6653_v27  ;;  %v2498_v18 = vadd.f32 %v6756_v19, %v6674_v42 }
 0x1b2   : > { %v6808_v34 = vpop.f32.mrf.mxu1  ;;  %7332 = vst [vmem:[#allocation37_spill] sm:$0xff] %v6810_v62  ;;  %v2486_v62 = vadd.f32 %v2327_v10, %v6638_v11  ;;  %v2495_v11 = vadd.f32 %v5133_v22, %v6659_v17 }
 0x1b3   : > { %7331 = vst [vmem:[#allocation15_spill] sm:$0xff] %v6808_v34  ;;  %v6814_v21 = vpop.f32.mrf.mxu0  ;;  %v2878_v32 = vadd.f32 %v6728_v35, %v2487_v56 }
 0x1b4   : > { %v6812_v49 = vpop.f32.mrf.mxu1  ;;  %7334 = vst [vmem:[#allocation39_spill] sm:$0xff] %v6814_v21  ;;  %v2488_v21 = vadd.f32 %v2337_v24, %v6644_v46  ;;  %v2497_v46 = vadd.f32 %v5136_v13, %v6665_v14  ;;  %v2499_v24 = vadd.f32 %v5139_v31, %v6671_v60  ;;  %v2884_v60 = vadd.f32 %v6742_v41, %v2493_v48 }
 0x1b5   : > { %7333 = vst [vmem:[#allocation38_spill] sm:$0xff] %v6812_v49  ;;  %v6818_v6 = vpop.f32.mrf.mxu0  ;;  %v2489_v49 = vadd.f32 %v5124_v3, %v6641_v23  ;;  %v2494_v23 = vadd.f32 %v2367_v50, %v6662_v55  ;;  %v2877_v3 = vadd.f32 %v6732_v53, %v2486_v62  ;;  %v2501_v41 = vadd.f32 %v6760_v2, %v6677_v1  ;;  %v7339_v2 = vld [vmem:[#allocation28_spill] sm:$0xff] }
 0x1b6   : > { %v6816_v20 = vpop.f32.mrf.mxu1  ;;  %7336 = vst [vmem:[#allocation41_spill] sm:$0xff] %v6818_v6  ;;  %v2490_v6 = vadd.f32 %v2347_v7, %v6650_v8  ;;  %v6868_v53 = vadd.f32 %v6750_v45, %v2497_v46  ;;  %v2502_v1 = vadd.f32 %v6772_v57, %v6686_v44  ;;  %v6901_v44 = vadd.f32 %v7339_v2, %v2498_v18  ;;  %v7340_v57 = vld [vmem:[#allocation29_spill] sm:$0xff]  ;;  %v7342_v46 = vld [vmem:[#allocation31_spill] sm:$0xff] }
 0x1b7   : > { %7335 = vst [vmem:[#allocation40_spill] sm:$0xff] %v6816_v20  ;;  %v6822_v0 = vpop.f32.mrf.mxu0  ;;  %v2491_v20 = vadd.f32 %v5127_v9, %v6647_v28  ;;  %v2496_v28 = vadd.f32 %v2377_v25, %v6668_v51  ;;  %v2880_v27 = vadd.f32 %v6734_v39, %v2489_v49 }
 0x1b8   : > { %v6820_v43 = vpop.f32.mrf.mxu1  ;;  %v2881_v55 = vadd.f32 %v6740_v63, %v2490_v6  ;;  %v6865_v6 = vadd.f32 %v6748_v59, %v2494_v23 }
 0x1b9   : > { %7337 = vst [vmem:[#allocation42_spill] sm:$0xff] %v6820_v43  ;;  %v6827_v34 = vpop.f32.mrf.mxu0  ;;  %v2882_v17 = vadd.f32 %v6738_v15, %v2491_v20  ;;  %v6871_v39 = vadd.f32 %v6752_v40, %v2496_v28  ;;  %v2504_v40 = vadd.f32 %v6780_v37, %v6692_v47  ;;  %v7341_v47 = vld [vmem:[#allocation30_spill] sm:$0xff] }
 0x1ba   : > { %v6825_v58 = vpop.f32.mrf.mxu1  ;;  %7338 = vst [vmem:[#allocation43_spill] sm:$0xff] %v6827_v34  ;;  %v2492_v34 = vadd.f32 %v2357_v61, %v6656_v30  ;;  %v2879_v30 = vadd.f32 %v6736_v26, %v2488_v21  ;;  %v6862_v21 = vadd.f32 %v6746_v12, %v2495_v11  ;;  %v2500_v61 = vadd.f32 %v6764_v5, %v6680_v38 }
 0x1bb   : > { %v6836_v43 = vpop.f32.mrf.mxu0  ;;  %v2505_v38 = vadd.f32 %v6776_v16, %v6689_v52  ;;  %v6904_v52 = vadd.f32 %v7340_v57, %v2501_v41 }
 0x1bc   : > { %v6834_v29 = vpop.f32.mrf.mxu1  ;;  %v6859_v62 = vadd.f32 %v6744_v36, %v2492_v34  ;;  %v6874_v34 = vadd.f32 %v6754_v4, %v2499_v24  ;;  %v2503_v36 = vadd.f32 %v6768_v33, %v6683_v54  ;;  %v6907_v37 = vadd.f32 %v7341_v47, %v2500_v61  ;;  %v7350_v47 = vld [vmem:[#allocation6_spill] sm:$0xff] }
 0x1bd   : > { %v5271_v10 = vpop.f32.mrf.mxu0 }
 0x1be   : > { %v5221_v8 = vpop.f32.mrf.mxu1  ;;  %v6910_v28 = vadd.f32 %v7342_v46, %v2503_v36 }
 0x1bf   : > { %v3268_v56 = vadd.f32 %v5221_v8, %v2878_v32  ;;  %v3498_v51 = vpop.f32.mrf.mxu0  ;;  %v7343_v8 = vld [vmem:[#allocation32_spill] sm:$0xff] }
 0x1c0   : > { %v3108_v14 = vpop.f32.mrf.mxu1 }
 0x1c1   : > { %v3658_v49 = vadd.f32 %v5271_v10, %v3268_v56  ;;  %v3267_v35 = vadd.f32 %v3108_v14, %v2877_v3  ;;  %v5274_v9 = vpop.f32.mrf.mxu0  ;;  %v6913_v10 = vadd.f32 %v7343_v8, %v2502_v1  ;;  %v7345_v14 = vld [vmem:[#allocation35_spill] sm:$0xff] }
 0x1c2   : > { %v5224_v26 = vpop.f32.mrf.mxu1 }
 0x1c3   : > { %3691 = vst.msk [vmem:[%s6855_s8 + $0x8] sm:$0xff] %vm3689_vm2, %v3658_v49  ;;  %v3792_v15 = vmul.f32 %v3658_v49, %v3658_v49  ;;  %v3657_v7 = vadd.f32 %v3498_v51, %v3267_v35  ;;  %v3270_v63 = vadd.f32 %v5224_v26, %v2880_v27  ;;  %v3508_v12 = vpop.f32.mrf.mxu0  ;;  %v3723_v50 = vsel %vm3689_vm2, %v3658_v49, 0.0  ;;  %v7346_v35 = vld [vmem:[#allocation16_spill] sm:$0xff]  ;;  %v7347_v26 = vld [vmem:[#allocation33_spill] sm:$0xff] }
 0x1c4   : > { %v3118_v22 = vpop.f32.mrf.mxu1  ;;  %v6922_v51 = vadd.f32 %v7345_v14, %v2504_v40 }
 0x1c5   : > { %3690 = vst.msk [vmem:[%s6855_s8] sm:$0xff] %vm3689_vm2, %v3657_v7  ;;  %v3722_v59 = vsel %vm3689_vm2, %v3657_v7, 0.0  ;;  %v3791_v13 = vmul.f32 %v3657_v7, %v3657_v7  ;;  %v3660_v42 = vadd.f32 %v5274_v9, %v3270_v63  ;;  %v3269_v25 = vadd.f32 %v3118_v22, %v2879_v30  ;;  %v5277_v33 = vpop.f32.mrf.mxu0  ;;  %v7344_v30 = vld [vmem:[#allocation34_spill] sm:$0xff] }
 0x1c6   : > { %v3724_v45 = vadd.f32 %v3723_v50, %v3722_v59  ;;  %v5227_v54 = vpop.f32.mrf.mxu1  ;;  %v3824_v31 = vsel %vm3689_vm2, %v3792_v15, 0.0  ;;  %v2507_v9 = vadd.f32 %v7347_v26, %v7346_v35 }
 0x1c7   : > { %v3823_v4 = vsel %vm3689_vm2, %v3791_v13, 0.0  ;;  %3693 = vst.msk [vmem:[%s6855_s8 + $0x18] sm:$0xff] %vm3689_vm2, %v3660_v42  ;;  %v3272_v19 = vadd.f32 %v5227_v54, %v2882_v17  ;;  %v3659_v5 = vadd.f32 %v3508_v12, %v3269_v25  ;;  %v3518_v32 = vpop.f32.mrf.mxu0  ;;  %v3794_v48 = vmul.f32 %v3660_v42, %v3660_v42 }
 0x1c8   : > { %v3825_v16 = vadd.f32 %v3824_v31, %v3823_v4  ;;  %v3128_v20 = vpop.f32.mrf.mxu1  ;;  %v6919_v17 = vadd.f32 %v7344_v30, %v2505_v38  ;;  %v3727_v15 = vsel %vm3689_vm2, %v3660_v42, 0.0 }
 0x1c9   : > { %v3662_v11 = vadd.f32 %v5277_v33, %v3272_v19  ;;  %v3271_v23 = vadd.f32 %v3128_v20, %v2881_v55  ;;  %3692 = vst.msk [vmem:[%s6855_s8 + $0x10] sm:$0xff] %vm3689_vm2, %v3659_v5  ;;  %v3725_v3 = vsel %vm3689_vm2, %v3659_v5, 0.0  ;;  %v3793_v24 = vmul.f32 %v3659_v5, %v3659_v5  ;;  %v5280_v27 = vpop.f32.mrf.mxu0 }
 0x1ca   : > { %v5230_v56 = vpop.f32.mrf.mxu1  ;;  %v3726_v55 = vadd.f32 %v3725_v3, %v3724_v45  ;;  %v3828_v61 = vsel %vm3689_vm2, %v3794_v48, 0.0  ;;  %v7348_v45 = vld [vmem:[#allocation17_spill] sm:$0xff]  ;;  %v6944_v48 = vadd.f32 %v7350_v47, %v2507_v9  ;;  %v7351_v3 = vld [vmem:[#allocation8_spill] sm:$0xff] }
 0x1cb   : > { %3695 = vst.msk [vmem:[%s6855_s8 + $0x28] sm:$0xff] %vm3689_vm2, %v3662_v11  ;;  %v3661_v49 = vadd.f32 %v3518_v32, %v3271_v23  ;;  %v3826_v7 = vsel %vm3689_vm2, %v3793_v24, 0.0  ;;  %v3274_v63 = vadd.f32 %v5230_v56, %v2884_v60  ;;  %v3528_v41 = vpop.f32.mrf.mxu0  ;;  %v3796_v50 = vmul.f32 %v3662_v11, %v3662_v11  ;;  %v7349_v60 = vld [vmem:[#allocation7_spill] sm:$0xff]  ;;  %v7352_v56 = vld [vmem:[#allocation18_spill] sm:$0xff] }
 0x1cc   : > { %v3138_v18 = vpop.f32.mrf.mxu1  ;;  %v3827_v36 = vadd.f32 %v3826_v7, %v3825_v16  ;;  %v3728_v22 = vadd.f32 %v3727_v15, %v3726_v55  ;;  %v2506_v25 = vadd.f32 %v7349_v60, %v7348_v45  ;;  %v3731_v31 = vsel %vm3689_vm2, %v3662_v11, 0.0  ;;  %v7355_v45 = vld [vmem:[#allocation9_spill] sm:$0xff] }
 0x1cd   : > { %3694 = vst.msk [vmem:[%s6855_s8 + $0x20] sm:$0xff] %vm3689_vm2, %v3661_v49  ;;  %v3729_v12 = vsel %vm3689_vm2, %v3661_v49, 0.0  ;;  %v3795_v59 = vmul.f32 %v3661_v49, %v3661_v49  ;;  %v3664_v13 = vadd.f32 %v5280_v27, %v3274_v63  ;;  %v3273_v1 = vadd.f32 %v3138_v18, %v6859_v62  ;;  %v5283_v38 = vpop.f32.mrf.mxu0  ;;  %v7353_v27 = vld [vmem:[#allocation36_spill] sm:$0xff] }
 0x1ce   : > { %v5233_v42 = vpop.f32.mrf.mxu1  ;;  %v3730_v54 = vadd.f32 %v3729_v12, %v3728_v22  ;;  %v3829_v33 = vadd.f32 %v3828_v61, %v3827_v36  ;;  %v6951_v24 = vadd.f32 %v7351_v3, %v2506_v25  ;;  %v2509_v30 = vadd.f32 %v7353_v27, %v7352_v56  ;;  %v7357_v25 = vld [vmem:[#allocation12_spill] sm:$0xff] }
 0x1cf   : > { %v3276_v40 = vadd.f32 %v5233_v42, %v6862_v21  ;;  %v3830_v4 = vsel %vm3689_vm2, %v3795_v59, 0.0  ;;  %3697 = vst.msk [vmem:[%s6855_s8 + $0x38] sm:$0xff] %vm3689_vm2, %v3664_v13  ;;  %v3798_v19 = vmul.f32 %v3664_v13, %v3664_v13  ;;  %v3663_v2 = vadd.f32 %v3528_v41, %v3273_v1  ;;  %v3538_v62 = vpop.f32.mrf.mxu0 }
 0x1d0   : > { %v3148_v57 = vpop.f32.mrf.mxu1  ;;  %v3831_v16 = vadd.f32 %v3830_v4, %v3829_v33  ;;  %v3732_v5 = vadd.f32 %v3731_v31, %v3730_v54  ;;  %v3832_v21 = vsel %vm3689_vm2, %v3796_v50, 0.0  ;;  %v3735_v55 = vsel %vm3689_vm2, %v3664_v13, 0.0 }
 0x1d1   : > { %v3666_v20 = vadd.f32 %v5283_v38, %v3276_v40  ;;  %v3275_v32 = vadd.f32 %v3148_v57, %v6865_v6  ;;  %3696 = vst.msk [vmem:[%s6855_s8 + $0x30] sm:$0xff] %vm3689_vm2, %v3663_v2  ;;  %v3733_v11 = vsel %vm3689_vm2, %v3663_v2, 0.0  ;;  %v3797_v23 = vmul.f32 %v3663_v2, %v3663_v2  ;;  %v5286_v8 = vpop.f32.mrf.mxu0  ;;  %v7354_v38 = vld [vmem:[#allocation19_spill] sm:$0xff] }
 0x1d2   : > { %v5236_v46 = vpop.f32.mrf.mxu1  ;;  %v3734_v6 = vadd.f32 %v3733_v11, %v3732_v5  ;;  %v3833_v14 = vadd.f32 %v3832_v21, %v3831_v16  ;;  %v3836_v7 = vsel %vm3689_vm2, %v3798_v19, 0.0  ;;  %v2508_v60 = vadd.f32 %v7355_v45, %v7354_v38 }
 0x1d3   : > { %3699 = vst.msk [vmem:[%s6855_s8 + $0x48] sm:$0xff] %vm3689_vm2, %v3666_v20  ;;  %v3834_v49 = vsel %vm3689_vm2, %v3797_v23, 0.0  ;;  %v3665_v35 = vadd.f32 %v3538_v62, %v3275_v32  ;;  %v3278_v26 = vadd.f32 %v5236_v46, %v6868_v53  ;;  %v3548_v15 = vpop.f32.mrf.mxu0  ;;  %v3800_v61 = vmul.f32 %v3666_v20, %v3666_v20 }
 0x1d4   : > { %v3158_v9 = vpop.f32.mrf.mxu1  ;;  %v3835_v63 = vadd.f32 %v3834_v49, %v3833_v14  ;;  %v3736_v18 = vadd.f32 %v3735_v55, %v3734_v6  ;;  %v3739_v33 = vsel %vm3689_vm2, %v3666_v20, 0.0 }
 0x1d5   : > { %v3277_v41 = vadd.f32 %v3158_v9, %v6871_v39  ;;  %3698 = vst.msk [vmem:[%s6855_s8 + $0x40] sm:$0xff] %vm3689_vm2, %v3665_v35  ;;  %v3737_v36 = vsel %vm3689_vm2, %v3665_v35, 0.0  ;;  %v3799_v22 = vmul.f32 %v3665_v35, %v3665_v35  ;;  %v3668_v12 = vadd.f32 %v5286_v8, %v3278_v26  ;;  %v5289_v59 = vpop.f32.mrf.mxu0  ;;  %v7356_v39 = vld [vmem:[#allocation20_spill] sm:$0xff]  ;;  %v7358_v8 = vld [vmem:[#allocation10_spill] sm:$0xff]  ;;  %v7359_v9 = vld [vmem:[#allocation5_spill] sm:$0xff] }
 0x1d6   : > { %v5239_v50 = vpop.f32.mrf.mxu1  ;;  %v3738_v53 = vadd.f32 %v3737_v36, %v3736_v18  ;;  %v3837_v13 = vadd.f32 %v3836_v7, %v3835_v63  ;;  %v2511_v54 = vadd.f32 %v7357_v25, %v7356_v39  ;;  %v3840_v62 = vsel %vm3689_vm2, %v3800_v61, 0.0  ;;  %v7361_v36 = vld [vmem:[#allocation21_spill] sm:$0xff] }
 0x1d7   : > { %v3667_v1 = vadd.f32 %v3548_v15, %v3277_v41  ;;  %v3280_v42 = vadd.f32 %v5239_v50, %v6874_v34  ;;  %v3838_v40 = vsel %vm3689_vm2, %v3799_v22, 0.0  ;;  %3701 = vst.msk [vmem:[%s6855_s8 + $0x58] sm:$0xff] %vm3689_vm2, %v3668_v12  ;;  %v3558_v4 = vpop.f32.mrf.mxu0  ;;  %v3802_v16 = vmul.f32 %v3668_v12, %v3668_v12  ;;  %v7360_v41 = vld [vmem:[#allocation11_spill] sm:$0xff]  ;;  %v7362_v22 = vld [vmem:[#allocation13_spill] sm:$0xff] }
 0x1d8   : > { %v3168_v31 = vpop.f32.mrf.mxu1  ;;  %v3839_v19 = vadd.f32 %v3838_v40, %v3837_v13  ;;  %v3740_v2 = vadd.f32 %v3739_v33, %v3738_v53  ;;  %v6982_v3 = vadd.f32 %v7358_v8, %v2509_v30  ;;  %v3743_v56 = vsel %vm3689_vm2, %v3668_v12, 0.0 }
 0x1d9   : > { %3700 = vst.msk [vmem:[%s6855_s8 + $0x50] sm:$0xff] %vm3689_vm2, %v3667_v1  ;;  %v3741_v34 = vsel %vm3689_vm2, %v3667_v1, 0.0  ;;  %v3801_v57 = vmul.f32 %v3667_v1, %v3667_v1  ;;  %v3670_v5 = vadd.f32 %v5289_v59, %v3280_v42  ;;  %v3279_v20 = vadd.f32 %v3168_v31, %v6901_v44  ;;  %v5292_v47 = vpop.f32.mrf.mxu0 }
 0x1da   : > { %v5242_v32 = vpop.f32.mrf.mxu1  ;;  %v3742_v21 = vadd.f32 %v3741_v34, %v3740_v2  ;;  %v3841_v11 = vadd.f32 %v3840_v62, %v3839_v19  ;;  %v6989_v15 = vadd.f32 %v7359_v9, %v2508_v60  ;;  %v6996_v61 = vadd.f32 %v7360_v41, %v2511_v54  ;;  %v7363_v62 = vld [vmem:[#allocation22_spill] sm:$0xff] }
 0x1db   : > { %v3842_v23 = vsel %vm3689_vm2, %v3801_v57, 0.0  ;;  %v3282_v46 = vadd.f32 %v5242_v32, %v6904_v52  ;;  %3703 = vst.msk [vmem:[%s6855_s8 + $0x68] sm:$0xff] %vm3689_vm2, %v3670_v5  ;;  %v3804_v27 = vmul.f32 %v3670_v5, %v3670_v5  ;;  %v3669_v6 = vadd.f32 %v3558_v4, %v3279_v20  ;;  %v3568_v44 = vpop.f32.mrf.mxu0  ;;  %v7366_v20 = vld [vmem:[#allocation38_spill] sm:$0xff] }
 0x1dc   : > { %v3178_v14 = vpop.f32.mrf.mxu1  ;;  %v3843_v55 = vadd.f32 %v3842_v23, %v3841_v11  ;;  %v3744_v49 = vadd.f32 %v3743_v56, %v3742_v21  ;;  %v3844_v52 = vsel %vm3689_vm2, %v3802_v16, 0.0  ;;  %v2510_v12 = vadd.f32 %v7362_v22, %v7361_v36  ;;  %v7364_v16 = vld [vmem:[#allocation15_spill] sm:$0xff] }
 0x1dd   : > { %v3672_v35 = vadd.f32 %v5292_v47, %v3282_v46  ;;  %v3281_v26 = vadd.f32 %v3178_v14, %v6907_v37  ;;  %3702 = vst.msk [vmem:[%s6855_s8 + $0x60] sm:$0xff] %vm3689_vm2, %v3669_v6  ;;  %v3745_v30 = vsel %vm3689_vm2, %v3669_v6, 0.0  ;;  %v3803_v7 = vmul.f32 %v3669_v6, %v3669_v6  ;;  %v5295_v18 = vpop.f32.mrf.mxu0 }
 0x1de   : > { %v5245_v63 = vpop.f32.mrf.mxu1  ;;  %v3746_v37 = vadd.f32 %v3745_v30, %v3744_v49  ;;  %v3845_v50 = vadd.f32 %v3844_v52, %v3843_v55  ;;  %v3747_v59 = vsel %vm3689_vm2, %v3670_v5, 0.0  ;;  %v3848_v45 = vsel %vm3689_vm2, %v3804_v27, 0.0  ;;  %v7367_v30 = vld [vmem:[#allocation14_spill] sm:$0xff] }
 0x1df   : > { %3705 = vst.msk [vmem:[%s6855_s8 + $0x78] sm:$0xff] %vm3689_vm2, %v3672_v35  ;;  %v3846_v53 = vsel %vm3689_vm2, %v3803_v7, 0.0  ;;  %v3671_v13 = vadd.f32 %v3568_v44, %v3281_v26  ;;  %v3284_v1 = vadd.f32 %v5245_v63, %v6910_v28  ;;  %v3578_v38 = vpop.f32.mrf.mxu0  ;;  %v3806_v54 = vmul.f32 %v3672_v35, %v3672_v35 }
 0x1e0   : > { %v3188_v42 = vpop.f32.mrf.mxu1  ;;  %v3847_v60 = vadd.f32 %v3846_v53, %v3845_v50  ;;  %v3748_v39 = vadd.f32 %v3747_v59, %v3746_v37  ;;  %v2513_v5 = vadd.f32 %v7364_v16, %v7363_v62  ;;  %v3751_v47 = vsel %vm3689_vm2, %v3672_v35, 0.0  ;;  %v7368_v53 = vld [vmem:[#allocation37_spill] sm:$0xff] }
 0x1e1   : > { %v3283_v25 = vadd.f32 %v3188_v42, %v6913_v10  ;;  %3704 = vst.msk [vmem:[%s6855_s8 + $0x70] sm:$0xff] %vm3689_vm2, %v3671_v13  ;;  %v3749_v33 = vsel %vm3689_vm2, %v3671_v13, 0.0  ;;  %v3805_v40 = vmul.f32 %v3671_v13, %v3671_v13  ;;  %v3674_v31 = vadd.f32 %v5295_v18, %v3284_v1  ;;  %v5298_v19 = vpop.f32.mrf.mxu0  ;;  %v7365_v10 = vld [vmem:[#allocation23_spill] sm:$0xff] }
 0x1e2   : > { %v5248_v4 = vpop.f32.mrf.mxu1  ;;  %v3750_v28 = vadd.f32 %v3749_v33, %v3748_v39  ;;  %v3849_v2 = vadd.f32 %v3848_v45, %v3847_v60  ;;  %v2512_v32 = vadd.f32 %v7366_v20, %v7365_v10  ;;  %v3852_v27 = vsel %vm3689_vm2, %v3806_v54, 0.0  ;;  %v7369_v45 = vld [vmem:[#allocation39_spill] sm:$0xff]  ;;  %v7370_v39 = vld [vmem:[#allocation24_spill] sm:$0xff] }
 0x1e3   : > { %v3673_v34 = vadd.f32 %v3578_v38, %v3283_v25  ;;  %v3286_v57 = vadd.f32 %v5248_v4, %v6919_v17  ;;  %v3850_v21 = vsel %vm3689_vm2, %v3805_v40, 0.0  ;;  %3707 = vst.msk [vmem:[%s6855_s8 + $0x88] sm:$0xff] %vm3689_vm2, %v3674_v31  ;;  %v3588_v23 = vpop.f32.mrf.mxu0  ;;  %v3808_v6 = vmul.f32 %v3674_v31, %v3674_v31  ;;  %v7371_v25 = vld [vmem:[#allocation40_spill] sm:$0xff] }
 0x1e4   : > { %v3198_v11 = vpop.f32.mrf.mxu1  ;;  %v3851_v46 = vadd.f32 %v3850_v21, %v3849_v2  ;;  %v3752_v8 = vadd.f32 %v3751_v47, %v3750_v28  ;;  %v2901_v7 = vadd.f32 %v7367_v30, %v2510_v12  ;;  %v3755_v63 = vsel %vm3689_vm2, %v3674_v31, 0.0 }
 0x1e5   : > { %3706 = vst.msk [vmem:[%s6855_s8 + $0x80] sm:$0xff] %vm3689_vm2, %v3673_v34  ;;  %v3753_v17 = vsel %vm3689_vm2, %v3673_v34, 0.0  ;;  %v3807_v56 = vmul.f32 %v3673_v34, %v3673_v34  ;;  %v3676_v14 = vadd.f32 %v5298_v19, %v3286_v57  ;;  %v3285_v44 = vadd.f32 %v3198_v11, %v6922_v51  ;;  %v5301_v49 = vpop.f32.mrf.mxu0 }
 0x1e6   : > { %v5251_v55 = vpop.f32.mrf.mxu1  ;;  %v3754_v35 = vadd.f32 %v3753_v17, %v3752_v8  ;;  %v3853_v26 = vadd.f32 %v3852_v27, %v3851_v46  ;;  %v2904_v13 = vadd.f32 %v7368_v53, %v2513_v5  ;;  %v2903_v60 = vadd.f32 %v7369_v45, %v2512_v32  ;;  %v7372_v8 = vld [vmem:[#allocation25_spill] sm:$0xff]  ;;  %v7373_v17 = vld [vmem:[#allocation42_spill] sm:$0xff] }
 0x1e7   : > { %v3854_v9 = vsel %vm3689_vm2, %v3807_v56, 0.0  ;;  %v3288_v52 = vadd.f32 %v5251_v55, %v6944_v48  ;;  %3709 = vst.msk [vmem:[%s6855_s8 + $0x98] sm:$0xff] %vm3689_vm2, %v3676_v14  ;;  %v3810_v18 = vmul.f32 %v3676_v14, %v3676_v14  ;;  %v3675_v41 = vadd.f32 %v3588_v23, %v3285_v44  ;;  %v3598_v22 = vpop.f32.mrf.mxu0 }
 0x1e8   : > { %v3208_v36 = vpop.f32.mrf.mxu1  ;;  %v3855_v51 = vadd.f32 %v3854_v9, %v3853_v26  ;;  %v3756_v37 = vadd.f32 %v3755_v63, %v3754_v35  ;;  %v3856_v48 = vsel %vm3689_vm2, %v3808_v6, 0.0  ;;  %v2515_v54 = vadd.f32 %v7371_v25, %v7370_v39 }
 0x1e9   : > { %v3678_v50 = vadd.f32 %v5301_v49, %v3288_v52  ;;  %v3287_v59 = vadd.f32 %v3208_v36, %v6951_v24  ;;  %3708 = vst.msk [vmem:[%s6855_s8 + $0x90] sm:$0xff] %vm3689_vm2, %v3675_v41  ;;  %v3757_v12 = vsel %vm3689_vm2, %v3675_v41, 0.0  ;;  %v3809_v1 = vmul.f32 %v3675_v41, %v3675_v41  ;;  %v5304_v38 = vpop.f32.mrf.mxu0 }
 0x1ea   : > { %v5254_v42 = vpop.f32.mrf.mxu1  ;;  %v3758_v33 = vadd.f32 %v3757_v12, %v3756_v37  ;;  %v3857_v40 = vadd.f32 %v3856_v48, %v3855_v51  ;;  %v3759_v24 = vsel %vm3689_vm2, %v3676_v14, 0.0  ;;  %v3860_v34 = vsel %vm3689_vm2, %v3810_v18, 0.0  ;;  %v7375_v37 = vld [vmem:[#allocation41_spill] sm:$0xff] }
 0x1eb   : > { %3711 = vst.msk [vmem:[%s6855_s8 + $0xa8] sm:$0xff] %vm3689_vm2, %v3678_v50  ;;  %v3858_v31 = vsel %vm3689_vm2, %v3809_v1, 0.0  ;;  %v3677_v4 = vadd.f32 %v3598_v22, %v3287_v59  ;;  %v3290_v19 = vadd.f32 %v5254_v42, %v6982_v3  ;;  %v3608_v2 = vpop.f32.mrf.mxu0  ;;  %v3812_v5 = vmul.f32 %v3678_v50, %v3678_v50 }
 0x1ec   : > { %v3218_v28 = vpop.f32.mrf.mxu1  ;;  %v3859_v57 = vadd.f32 %v3858_v31, %v3857_v40  ;;  %v3760_v62 = vadd.f32 %v3759_v24, %v3758_v33  ;;  %v2514_v56 = vadd.f32 %v7373_v17, %v7372_v8  ;;  %v3763_v6 = vsel %vm3689_vm2, %v3678_v50, 0.0  ;;  %v7376_v24 = vld [vmem:[#allocation43_spill] sm:$0xff] }
 0x1ed   : > { %v3289_v16 = vadd.f32 %v3218_v28, %v6989_v15  ;;  %3710 = vst.msk [vmem:[%s6855_s8 + $0xa0] sm:$0xff] %vm3689_vm2, %v3677_v4  ;;  %v3761_v10 = vsel %vm3689_vm2, %v3677_v4, 0.0  ;;  %v3811_v20 = vmul.f32 %v3677_v4, %v3677_v4  ;;  %v3680_v32 = vadd.f32 %v5304_v38, %v3290_v19  ;;  %v5307_v21 = vpop.f32.mrf.mxu0  ;;  %v7374_v15 = vld [vmem:[#allocation26_spill] sm:$0xff]  ;;  %v7377_v4 = vld [vmem:[#allocation27_spill] sm:$0xff] }
 0x1ee   : > { %v5257_v47 = vpop.f32.mrf.mxu1  ;;  %v3762_v3 = vadd.f32 %v3761_v10, %v3760_v62  ;;  %v3861_v11 = vadd.f32 %v3860_v34, %v3859_v57  ;;  %v2517_v27 = vadd.f32 %v6825_v58, %v7374_v15  ;;  %v3864_v9 = vsel %vm3689_vm2, %v3812_v5, 0.0 }
 0x1ef   : > { %v3679_v23 = vadd.f32 %v3608_v2, %v3289_v16  ;;  %v3292_v46 = vadd.f32 %v5257_v47, %v6996_v61  ;;  %v3862_v14 = vsel %vm3689_vm2, %v3811_v20, 0.0  ;;  %3713 = vst.msk [vmem:[%s6855_s8 + $0xb8] sm:$0xff] %vm3689_vm2, %v3680_v32  ;;  %v3618_v55 = vpop.f32.mrf.mxu0  ;;  %v3814_v52 = vmul.f32 %v3680_v32, %v3680_v32 }
 0x1f0   : > { %v3228_v44 = vpop.f32.mrf.mxu1  ;;  %v3863_v49 = vadd.f32 %v3862_v14, %v3861_v11  ;;  %v3764_v35 = vadd.f32 %v3763_v6, %v3762_v3  ;;  %v2906_v50 = vadd.f32 %v7375_v37, %v2515_v54  ;;  %v3767_v59 = vsel %vm3689_vm2, %v3680_v32, 0.0 }
 0x1f1   : > { %3712 = vst.msk [vmem:[%s6855_s8 + $0xb0] sm:$0xff] %vm3689_vm2, %v3679_v23  ;;  %v3765_v61 = vsel %vm3689_vm2, %v3679_v23, 0.0  ;;  %v3813_v26 = vmul.f32 %v3679_v23, %v3679_v23  ;;  %v3682_v58 = vadd.f32 %v5307_v21, %v3292_v46  ;;  %v3291_v30 = vadd.f32 %v3228_v44, %v2901_v7  ;;  %v5310_v18 = vpop.f32.mrf.mxu0 }
 0x1f2   : > { %v5260_v63 = vpop.f32.mrf.mxu1  ;;  %v3766_v41 = vadd.f32 %v3765_v61, %v3764_v35  ;;  %v3865_v36 = vadd.f32 %v3864_v9, %v3863_v49  ;;  %v2905_v39 = vadd.f32 %v6822_v0, %v2514_v56  ;;  %v3868_v25 = vsel %vm3689_vm2, %v3814_v52, 0.0 }
 0x1f3   : > { %v3866_v22 = vsel %vm3689_vm2, %v3813_v26, 0.0  ;;  %v3294_v51 = vadd.f32 %v5260_v63, %v2904_v13  ;;  %3715 = vst.msk [vmem:[%s6855_s8 + $0xc8] sm:$0xff] %vm3689_vm2, %v3682_v58  ;;  %v3816_v53 = vmul.f32 %v3682_v58, %v3682_v58  ;;  %v3681_v48 = vadd.f32 %v3618_v55, %v3291_v30  ;;  %v3628_v1 = vpop.f32.mrf.mxu0 }
 0x1f4   : > { %v3238_v12 = vpop.f32.mrf.mxu1  ;;  %v3867_v7 = vadd.f32 %v3866_v22, %v3865_v36  ;;  %v3768_v42 = vadd.f32 %v3767_v59, %v3766_v41  ;;  %v2908_v31 = vadd.f32 %v7376_v24, %v2517_v27  ;;  %v2516_v19 = vadd.f32 %v6834_v29, %v7377_v4 }
 0x1f5   : > { %v3684_v38 = vadd.f32 %v5310_v18, %v3294_v51  ;;  %v3293_v45 = vadd.f32 %v3238_v12, %v2903_v60  ;;  %3714 = vst.msk [vmem:[%s6855_s8 + $0xc0] sm:$0xff] %vm3689_vm2, %v3681_v48  ;;  %v3769_v13 = vsel %vm3689_vm2, %v3681_v48, 0.0  ;;  %v3815_v54 = vmul.f32 %v3681_v48, %v3681_v48  ;;  %v5313_v40 = vpop.f32.mrf.mxu0 }
 0x1f6   : > { %v5263_v33 = vpop.f32.mrf.mxu1  ;;  %v3770_v28 = vadd.f32 %v3769_v13, %v3768_v42  ;;  %v3869_v2 = vadd.f32 %v3868_v25, %v3867_v7  ;;  %v3771_v0 = vsel %vm3689_vm2, %v3682_v58, 0.0  ;;  %v3872_v5 = vsel %vm3689_vm2, %v3816_v53, 0.0 }
 0x1f7   : > { %3717 = vst.msk [vmem:[%s6855_s8 + $0xd8] sm:$0xff] %vm3689_vm2, %v3684_v38  ;;  %v3870_v60 = vsel %vm3689_vm2, %v3815_v54, 0.0  ;;  %v3683_v34 = vadd.f32 %v3628_v1, %v3293_v45  ;;  %v3296_v57 = vadd.f32 %v5263_v33, %v2906_v50  ;;  %v3638_v16 = vpop.f32.mrf.mxu0  ;;  %v3818_v47 = vmul.f32 %v3684_v38, %v3684_v38 }
 0x1f8   : > { %v3248_v62 = vpop.f32.mrf.mxu1  ;;  %v3871_v10 = vadd.f32 %v3870_v60, %v3869_v2  ;;  %v3772_v20 = vadd.f32 %v3771_v0, %v3770_v28  ;;  %v2907_v15 = vadd.f32 %v6836_v43, %v2516_v19  ;;  %v3775_v27 = vsel %vm3689_vm2, %v3684_v38, 0.0 }
 0x1f9   : > { %v3295_v32 = vadd.f32 %v3248_v62, %v2905_v39  ;;  %3716 = vst.msk [vmem:[%s6855_s8 + $0xd0] sm:$0xff] %vm3689_vm2, %v3683_v34  ;;  %v3773_v29 = vsel %vm3689_vm2, %v3683_v34, 0.0  ;;  %v3817_v21 = vmul.f32 %v3683_v34, %v3683_v34  ;;  %v3686_v3 = vadd.f32 %v5313_v40, %v3296_v57  ;;  %v5316_v56 = vpop.f32.mrf.mxu0 }
 0x1fa   : > { %v5266_v11 = vpop.f32.mrf.mxu1  ;;  %v3774_v23 = vadd.f32 %v3773_v29, %v3772_v20  ;;  %v3873_v46 = vadd.f32 %v3872_v5, %v3871_v10  ;;  %v3876_v61 = vsel %vm3689_vm2, %v3818_v47, 0.0 }
 0x1fb   : > { %v3685_v8 = vadd.f32 %v3638_v16, %v3295_v32  ;;  %v3298_v17 = vadd.f32 %v5266_v11, %v2908_v31  ;;  %v3874_v6 = vsel %vm3689_vm2, %v3817_v21, 0.0  ;;  %3719 = vst.msk [vmem:[%s6855_s8 + $0xe8] sm:$0xff] %vm3689_vm2, %v3686_v3  ;;  %v3820_v26 = vmul.f32 %v3686_v3, %v3686_v3  ;;  %v3648_v63 = vpop.f32.mrf.mxu0 }
 0x1fc   : > { %v3258_v14 = vpop.f32.mrf.mxu1  ;;  %v3875_v44 = vadd.f32 %v3874_v6, %v3873_v46  ;;  %v3776_v55 = vadd.f32 %v3775_v27, %v3774_v23  ;;  %v3779_v18 = vsel %vm3689_vm2, %v3686_v3, 0.0 }
 0x1fd   : > { %3718 = vst.msk [vmem:[%s6855_s8 + $0xe0] sm:$0xff] %vm3689_vm2, %v3685_v8  ;;  %v3777_v49 = vsel %vm3689_vm2, %v3685_v8, 0.0  ;;  %v3819_v35 = vmul.f32 %v3685_v8, %v3685_v8  ;;  %v3688_v43 = vadd.f32 %v5316_v56, %v3298_v17  ;;  %v3297_v9 = vadd.f32 %v3258_v14, %v2907_v15 }
 0x1fe   : > { %v3778_v52 = vadd.f32 %v3777_v49, %v3776_v55  ;;  %v3877_v58 = vadd.f32 %v3876_v61, %v3875_v44  ;;  %v3880_v51 = vsel %vm3689_vm2, %v3820_v26, 0.0 }
 0x1ff   : > { %v3878_v30 = vsel %vm3689_vm2, %v3819_v35, 0.0  ;;  %3721 = vst.msk [vmem:[%s6855_s8 + $0xf8] sm:$0xff] %vm3689_vm2, %v3688_v43  ;;  %v3687_v41 = vadd.f32 %v3648_v63, %v3297_v9  ;;  %v3822_v37 = vmul.f32 %v3688_v43, %v3688_v43  ;;  %v3783_v12 = vsel %vm3689_vm2, %v3688_v43, 0.0 }
 0x200   : > { %v3879_v36 = vadd.f32 %v3878_v30, %v3877_v58  ;;  %v3780_v22 = vadd.f32 %v3779_v18, %v3778_v52 }
 0x201   : > { %3720 = vst.msk [vmem:[%s6855_s8 + $0xf0] sm:$0xff] %vm3689_vm2, %v3687_v41  ;;  %v3781_v50 = vsel %vm3689_vm2, %v3687_v41, 0.0  ;;  %v3821_v59 = vmul.f32 %v3687_v41, %v3687_v41  ;;  %v3884_v38 = vsel %vm3689_vm2, %v3822_v37, 0.0 }
 0x202   : > { %v3782_v53 = vadd.f32 %v3781_v50, %v3780_v22  ;;  %v3881_v48 = vadd.f32 %v3880_v51, %v3879_v36 }
 0x203   : > { %v3882_v1 = vsel %vm3689_vm2, %v3821_v59, 0.0 }
 0x204   : > { %v3784_v7 = vadd.f32 %v3783_v12, %v3782_v53  ;;  %v3883_v42 = vadd.f32 %v3882_v1, %v3881_v48 }
 0x206   : > { %v3785_v45 = vrot.slane %v3784_v7, 4  ;;  %v3885_v39 = vadd.f32 %v3884_v38, %v3883_v42 }
 0x208   : > { %v3786_v25 = vadd.f32 %v3785_v45, %v3784_v7  ;;  %v3886_v13 = vrot.slane %v3885_v39, 4 }
 0x20a   : > { %v3787_v54 = vrot.slane %v3786_v25, 2  ;;  %v3887_v33 = vadd.f32 %v3886_v13, %v3885_v39 }
 0x20c   : > { %v3788_v40 = vadd.f32 %v3787_v54, %v3786_v25  ;;  %v3888_v24 = vrot.slane %v3887_v33, 2 }
 0x20e   : > { %v3789_v31 = vrot.slane %v3788_v40, 1  ;;  %v3889_v4 = vadd.f32 %v3888_v24, %v3887_v33 }
 0x210   : > { %v3890_v19 = vrot.slane %v3889_v4, 1  ;;  %v3790_v28 = vadd.f32 %v3789_v31, %v3788_v40 }
 0x212   : > { %v3891_v2 = vadd.f32 %v3890_v19, %v3889_v4 }
 0x214   : > { %v3893_v0 = vsel %vm3892_vm3, %v3790_v28, %v3891_v2 }
 0x215   : > { %3895 = vst.msk [vmem:[%s216_s18] sm:$0x3] %vm3894_vm4, %v3893_v0 }
 0x216   : > { %5388 = shalt.err (!%p5385_p5)
}
 0x217   : > { %s5389_s4 = scalar_lea.hbm %s7108_s26, 32  ;;  %s5393_s7 = scalar_lea.hbm %s7151_s3, 64 }
 0x218   : > { %p5390_p6 = scmp.ne.s32.totalorder %s7108_s26, %s5389_s4  ;;  %p5394_p10 = scmp.lt.s32.totalorder %s7108_s26, %s7151_s3 }
 0x219   : > { %p5395_p11 = scmp.lt.s32.totalorder %s5393_s7, %s5389_s4 }
 0x21a   : > { %p5391_p7 = pnand %p5390_p6, %p5514_p4 }
 0x21b   : > { %p5396_p12 = por %p5395_p11, %p5394_p10 }
 0x21c   : > { %p5392_p9 = pneg %p5391_p7 }
 0x21e   : > { %p5397_p13 = pnand %p5396_p12, %p5392_p9 }
 0x220   : > { %5400 = shalt.err (!%p5397_p13)
}
 0x221   : > { %5320 = dma.vmem_to_hbm [thread:$0]  (%p5514_p4), %s3925_s19, 32, %s7108_s26, %s3906_s27  }
 0x222 PF: > { %p5326_p0 = scmp.ge.s32.totalorder %s5451_s17, 2  ;;  %s3948_s10 = sand.u32 1, %s5431_s12  }
 0x223   : > { %s3949_s11 = scalar_lea.sflag [#allocation3], %s3948_s10 }
 0x224   : > { %p5323_p1 = pnand %p5326_p0, %p5521_p8 }
 0x226   : > { %p5324_p2 = pneg %p5323_p1 }
 0x228   : > { %5426 = dma.done.wait (%p5324_p2), %s3949_s11, 32  }
 0x229   : > { %5428 = vsyncadd (%p5324_p2), %s3949_s11, 4294967264  ;;  %s17_s17 = sadd.s32 1, %s5451_s17   ;;  %s7378_s12 = smov %s5435_s13 }
 0x22a   : > { %p14_p3 = scmp.ge.s32.totalorder %s17_s17, 4   ;;  %s7379_s13 = smov %s5439_s14 }
 0x22b   : > { %s7380_s14 = smov %s5527_s25  ;;  %s7381_s15 = smov %s5447_s16 }
 0x22c   : > { %s7382_s16 = smov %s7384_s20  ;;  %16 = sbr.rel (!%p14_p3) target bundleno = 4 (0x4), region = 88 }
 0x231   :  { %3954 = vsyncpa [#allocation3], 1 }
 0x232   :  { %3956 = vsyncpa [#allocation3 + $0x1], 1 }

</bundles_post_ra>
